<compile_context>
chip_gen: v6e
topology: v6e:2x2x1
jax: 0.10.0
libtpu: 0.0.40
codegen_flags: <defaults>
</compile_context>

<pallas_src>
import functools

import numpy as np
import jax
import jax.numpy as jnp
from jax import lax
from jax.experimental import pallas as pl
from jax.experimental.pallas import tpu as pltpu


# -----------------------------------------------------------------------------
# Fused Pallas kernel: conv1 GEMM -> conv2 -> conv3 -> dueling head.
# 7 bf16 MXU GEMMs total (f32 accumulation); every activation stays in VMEM.
# -----------------------------------------------------------------------------
def duelcnn_kernel(p1_ref, w1_ref, b1_ref,
                   g2s_ref, w2s_ref, b2_ref,
                   g3s_ref, w3s_ref, b3_ref,
                   wh1_ref, bh1_ref, wh2_ref, bh2_ref,
                   q_ref,
                   p2_sc, p3_sc, flat_sc,
                   *, out_size, m1):
    bf16 = jnp.bfloat16

    def mm(a, b):  # bf16 operands (native MXU path), f32 accumulation
        return jnp.dot(a.astype(bf16), b.astype(bf16),
                       preferred_element_type=jnp.float32)

    # ---- conv1: ONE GEMM over pre-extracted patches (BN folded, ReLU) -------
    h1 = jnp.maximum(mm(p1_ref[...], w1_ref[...]) + b1_ref[...], 0.0)
    # zero the lane-aligned pad rows (they hold relu(b1), not 0) so nothing
    # downstream can ever pick them up
    rows = lax.broadcasted_iota(jnp.int32, h1.shape, 0)
    h1 = jnp.where(rows < m1, h1, 0.0)                        # (256, 32)

    # ---- conv2: ONE stacked gather GEMM + ONE deep weight GEMM --------------
    m2, c1 = p2_sc.shape[0], h1.shape[1]
    k2 = g2s_ref.shape[0] // m2                               # 16 kernel positions
    gath2 = mm(g2s_ref[...], h1)                              # (k2*m2, c1) row blocks
    for k in range(k2):                                       # static lane-offset copies
        p2_sc[:, k * c1:(k + 1) * c1] = gath2[k * m2:(k + 1) * m2, :]
    h2 = jnp.maximum(mm(p2_sc[...], w2s_ref[...]) + b2_ref[...], 0.0)   # (32, 64)

    # ---- conv3 ---------------------------------------------------------------
    m3, c2 = p3_sc.shape[0], h2.shape[1]
    k3 = g3s_ref.shape[0] // m3                               # 9 kernel positions
    gath3 = mm(g3s_ref[...], h2)                              # (k3*m3, c2)
    for k in range(k3):
        p3_sc[:, k * c2:(k + 1) * c2] = gath3[k * m3:(k + 1) * m3, :]
    h3 = jnp.maximum(mm(p3_sc[...], w3s_ref[...]) + b3_ref[...], 0.0)   # (8, 64)

    # ---- NHWC flatten: static row copies into scratch (no matmul) -----------
    batch, c3 = flat_sc.shape[0], h3.shape[1]
    hw3 = m3 // batch
    for b in range(batch):
        for pos in range(hw3):
            r = b * hw3 + pos
            flat_sc[b:b + 1, pos * c3:(pos + 1) * c3] = h3[r:r + 1, :]

    # ---- dueling head: fused A|V first layer, block-diagonal second layer ---
    hid = mm(flat_sc[...], wh1_ref[...]) + bh1_ref[...]       # (batch, 256)
    hid = jnp.where(hid > 0, hid, 0.01 * hid)                 # LeakyReLU (f32)
    y = mm(hid, wh2_ref[...]) + bh2_ref[...]                  # (batch, 128): [A | V | 0]
    lane = lax.broadcasted_iota(jnp.int32, y.shape, 1)
    ax_mean = jnp.sum(jnp.where(lane < out_size, y, 0.0), axis=1,
                      keepdims=True) * (1.0 / out_size)       # mean over REAL A cols
    vx = jnp.sum(jnp.where(lane == out_size, y, 0.0), axis=1, keepdims=True)
    q_ref[...] = y + vx - ax_mean                             # lane-dense (batch,128) store


def _zmap(nd):
    return lambda i: (0,) * nd


def duelcnn_pallas(p1, prep, *, out_size, m1, batch):
    args = (p1, prep['w1'], prep['b1'],
            prep['g2s'], prep['w2s'], prep['b2'],
            prep['g3s'], prep['w3s'], prep['b3'],
            prep['wh1'], prep['bh1'], prep['wh2'], prep['bh2'])
    c1 = prep['w1'].shape[1]
    c2 = prep['w2s'].shape[1]
    c3 = prep['w3s'].shape[1]
    m2 = prep['g3s'].shape[1]
    k2 = prep['g2s'].shape[0] // m2
    hw3 = prep['wh1'].shape[0] // c3
    m3 = batch * hw3
    k3 = prep['g3s'].shape[0] // m3
    head_n = prep['wh2'].shape[1]
    kern = functools.partial(duelcnn_kernel, out_size=out_size, m1=m1)
    # TODO(synk): batch=2 fits one TensorCore; for large batches add a leading
    # "parallel" batch grid axis with per-image selection matrices so work
    # shards across v7x's two TCs and the O(batch^2) selection footprint shrinks.
    return pl.pallas_call(
        kern,
        out_shape=jax.ShapeDtypeStruct((batch, head_n), jnp.float32),
        grid=(1,),
        in_specs=[pl.BlockSpec(a.shape, _zmap(a.ndim)) for a in args],
        out_specs=pl.BlockSpec((batch, head_n), _zmap(2)),
        scratch_shapes=[pltpu.VMEM((m2, k2 * c1), jnp.float32),
                        pltpu.VMEM((m3, k3 * c2), jnp.float32),
                        pltpu.VMEM((batch, hw3 * c3), jnp.float32)],
        compiler_params=pltpu.CompilerParams(
            dimension_semantics=("arbitrary",)),
    )(*args)


# -----------------------------------------------------------------------------
# Forward: only conv1's patch extraction runs in XLA, everything else in Pallas
# -----------------------------------------------------------------------------
def duelcnn_forward(x_nchw, prep, *, out_size):
    n, c, h, w = x_nchw.shape
    ho = (h - 8) // 4 + 1
    wo = (w - 8) // 4 + 1
    m1 = n * ho * wo
    m1p = prep['g2s'].shape[1]                    # lane-aligned row pad (256)
    x_nhwc = jnp.transpose(x_nchw, (0, 2, 3, 1)).astype(jnp.float32)
    # TODO(synk): conv1's overlapping 8x8/stride-4 patch extraction stays as a
    # single XLA gather op; in-kernel strided window reads at this layout have
    # no clean/robust Mosaic lowering.
    patches = lax.conv_general_dilated_patches(
        x_nhwc, filter_shape=(8, 8), window_strides=(4, 4), padding='VALID',
        dimension_numbers=('NHWC', 'HWIO', 'NHWC'))   # features ordered (c, kh, kw)
    p1 = patches.reshape(m1, c * 8 * 8)
    p1 = jnp.pad(p1, ((0, m1p - m1), (0, 0))).astype(jnp.bfloat16)
    q_full = duelcnn_pallas(p1, prep, out_size=out_size, m1=m1, batch=n)
    return q_full[:, :out_size]                   # lane-dense kernel store, slice outside


# -----------------------------------------------------------------------------
# One-time offline parameter repack (BN folding, flatten perm, A/V fusion,
# stacked 0/1 selection matrices, bf16 casts)
# -----------------------------------------------------------------------------
def _conv_selection_mats(batch, hin, win, k, stride, cols_pad):
    ho = (hin - k) // stride + 1
    wo = (win - k) // stride + 1
    g = np.zeros((k * k, batch * ho * wo, cols_pad), np.float32)
    for i in range(k):
        for j in range(k):
            for b in range(batch):
                for y in range(ho):
                    for x in range(wo):
                        r_out = (b * ho + y) * wo + x
                        r_in = (b * hin + stride * y + i) * win + stride * x + j
                        g[i * k + j, r_out, r_in] = 1.0
    return g, ho, wo


def prepare_params(p, output_size, batch, h, w, eps=1e-5):
    bf16 = jnp.bfloat16

    def bn(name):
        scale = p[f'bn{name}_gamma'] / jnp.sqrt(p[f'bn{name}_var'] + eps)
        bias = scale * (p[f'conv{name}_b'] - p[f'bn{name}_mean']) + p[f'bn{name}_beta']
        return scale, bias

    s1, bias1 = bn('1')
    s2, bias2 = bn('2')
    s3, bias3 = bn('3')

    # conv1 weight matrix: rows in (c, kh, kw) order to match
    # conv_general_dilated_patches' feature ordering; BN scale folded in.
    w1 = jnp.transpose(p['conv1_w'], (1, 2, 3, 0)).reshape(4 * 8 * 8, 32) * s1
    b1 = bias1.reshape(1, 32)

    # conv2 / conv3: column-stacked (k*k*Cin, Cout) weight blocks (BN folded).
    w2s = jnp.transpose(p['conv2_w'], (2, 3, 1, 0)).reshape(16 * 32, 64) * s2
    b2 = bias2.reshape(1, 64)
    w3s = jnp.transpose(p['conv3_w'], (2, 3, 1, 0)).reshape(9 * 64, 64) * s3
    b3 = bias3.reshape(1, 64)

    # spatial bookkeeping + stacked 0/1 selection (row-gather) matrices
    h1o, w1o = (h - 8) // 4 + 1, (w - 8) // 4 + 1
    m1 = batch * h1o * w1o
    m1p = ((m1 + 127) // 128) * 128               # lane-aligned pad: 242 -> 256
    g2, h2o, w2o = _conv_selection_mats(batch, h1o, w1o, 4, 2, m1p)
    m2 = batch * h2o * w2o
    g3, h3o, w3o = _conv_selection_mats(batch, h2o, w2o, 3, 1, m2)
    hw3 = h3o * w3o

    g2s = jnp.asarray(g2.reshape(16 * m2, m1p), bf16)          # (512, 256)
    g3s = jnp.asarray(g3.reshape(9 * batch * hw3, m2), bf16)   # (72, 32)

    # dueling head: permute first-layer inputs from PyTorch (c,h,w) flatten
    # order to our NHWC (h,w,c) order, fuse A|V into one 256-wide matmul.
    def permute_l1(w_pt):                          # -> (hw3*64, 128)
        wt = w_pt.T.reshape(64, h3o, w3o, 128)     # (c, h, w, out)
        return jnp.transpose(wt, (1, 2, 0, 3)).reshape(hw3 * 64, 128)

    wh1 = jnp.concatenate([permute_l1(p['al1_w']), permute_l1(p['vl1_w'])], axis=1)
    bh1 = jnp.concatenate([p['al1_b'], p['vl1_b']]).reshape(1, 256)

    head_n = 128                                   # lane-padded head output
    wh2 = jnp.zeros((256, head_n), jnp.float32)
    wh2 = wh2.at[:128, :output_size].set(p['al2_w'].T)
    wh2 = wh2.at[128:, output_size].set(p['vl2_w'][0, :])
    bh2 = jnp.zeros((1, head_n), jnp.float32)
    bh2 = bh2.at[0, :output_size].set(p['al2_b'])
    bh2 = bh2.at[0, output_size].set(p['vl2_b'][0])

    # every MXU operand in bf16 (halves constant DMA, native MXU path);
    # biases stay f32 and are added to f32 accumulators on the VPU.
    return {'w1': w1.astype(bf16), 'b1': b1,
            'g2s': g2s, 'w2s': w2s.astype(bf16), 'b2': b2,
            'g3s': g3s, 'w3s': w3s.astype(bf16), 'b3': b3,
            'wh1': wh1.astype(bf16), 'bh1': bh1,
            'wh2': wh2.astype(bf16), 'bh2': bh2}


# -----------------------------------------------------------------------------
# Parameter init (PyTorch layout) and pure-JAX reference
# -----------------------------------------------------------------------------
def init_params(key, output_size):
    keys = iter(jax.random.split(key, 40))

    def nrm(shape, s=0.05):
        return jax.random.normal(next(keys), shape, jnp.float32) * s

    def uni(shape, lo, hi):
        return jax.random.uniform(next(keys), shape, jnp.float32, lo, hi)

    p = {}
    for name, (o, i, k) in (('1', (32, 4, 8)), ('2', (64, 32, 4)),
                            ('3', (64, 64, 3))):
        p[f'conv{name}_w'] = nrm((o, i, k, k))
        p[f'conv{name}_b'] = nrm((o,))
        p[f'bn{name}_gamma'] = 1.0 + nrm((o,))
        p[f'bn{name}_beta'] = nrm((o,))
        p[f'bn{name}_mean'] = nrm((o,))
        p[f'bn{name}_var'] = uni((o,), 0.5, 1.5)
    lin_in = 2 * 2 * 64      # 51x51 input: 51 ->(8,4) 11 ->(4,2) 4 ->(3,1) 2
    p['al1_w'] = nrm((128, lin_in)); p['al1_b'] = nrm((128,))
    p['al2_w'] = nrm((output_size, 128)); p['al2_b'] = nrm((output_size,))
    p['vl1_w'] = nrm((128, lin_in)); p['vl1_b'] = nrm((128,))
    p['vl2_w'] = nrm((1, 128)); p['vl2_b'] = nrm((1,))
    return p


def ref_forward(x_nchw, p, eps=1e-5):
    def block(x, w, b, g, bt, m, v, s):
        y = lax.conv_general_dilated(
            x, jnp.transpose(w, (2, 3, 1, 0)), (s, s), 'VALID',
            dimension_numbers=('NHWC', 'HWIO', 'NHWC'),
            precision=lax.Precision.HIGHEST) + b
        y = g * (y - m) / jnp.sqrt(v + eps) + bt
        return jnp.maximum(y, 0.0)

    def lrelu(z):
        return jnp.where(z > 0, z, 0.01 * z)

    mm = functools.partial(jnp.matmul, precision=lax.Precision.HIGHEST)
    x = jnp.transpose(x_nchw, (0, 2, 3, 1)).astype(jnp.float32)
    x = block(x, p['conv1_w'], p['conv1_b'], p['bn1_gamma'], p['bn1_beta'],
              p['bn1_mean'], p['bn1_var'], 4)
    x = block(x, p['conv2_w'], p['conv2_b'], p['bn2_gamma'], p['bn2_beta'],
              p['bn2_mean'], p['bn2_var'], 2)
    x = block(x, p['conv3_w'], p['conv3_b'], p['bn3_gamma'], p['bn3_beta'],
              p['bn3_mean'], p['bn3_var'], 1)
    f = jnp.transpose(x, (0, 3, 1, 2)).reshape(x.shape[0], -1)
    ax = mm(lrelu(mm(f, p['al1_w'].T) + p['al1_b']), p['al2_w'].T) + p['al2_b']
    vx = mm(lrelu(mm(f, p['vl1_w'].T) + p['vl1_b']), p['vl2_w'].T) + p['vl2_b']
    return vx + (ax - ax.mean(axis=1, keepdims=True))


# -----------------------------------------------------------------------------
if __name__ == "__main__":
    # h = w = 51 keeps the module's conv2d_size_calc consistent with the real
    # conv output sizes: 51 -> 11 -> 4 -> 2, so linear_input_size = 256.
    batch, in_ch, h, w, output_size = 2, 4, 51, 51, 6

    key = jax.random.PRNGKey(0)
    kx, kp = jax.random.split(key)
    x = jax.random.normal(kx, (batch, in_ch, h, w), jnp.float32)
    params = init_params(kp, output_size)

    prep = prepare_params(params, output_size, batch, h, w)   # one-time repack
    fwd = jax.jit(functools.partial(duelcnn_forward, out_size=output_size))
    q = jax.block_until_ready(fwd(x, prep))

    q_ref = ref_forward(x, params)
    assert q.shape == (batch, output_size), q.shape
    # kernel runs all matmuls with bf16 operands / f32 accumulation -> 2e-2 tol
    assert jnp.allclose(q, q_ref, rtol=2e-2, atol=2e-2), (q, q_ref)

    print("KERNEL_OK")
</pallas_src>

<mosaic_0001>
module attributes {stable_mosaic.version = 11 : i64} {
  func.func @duelcnn_kernel(%arg0: i32, %arg1: memref<256x256xbf16, #tpu.memory_space<vmem>>, %arg2: memref<256x32xbf16, #tpu.memory_space<vmem>>, %arg3: memref<1x32xf32, #tpu.memory_space<vmem>>, %arg4: memref<512x256xbf16, #tpu.memory_space<vmem>>, %arg5: memref<512x64xbf16, #tpu.memory_space<vmem>>, %arg6: memref<1x64xf32, #tpu.memory_space<vmem>>, %arg7: memref<72x32xbf16, #tpu.memory_space<vmem>>, %arg8: memref<576x64xbf16, #tpu.memory_space<vmem>>, %arg9: memref<1x64xf32, #tpu.memory_space<vmem>>, %arg10: memref<256x256xbf16, #tpu.memory_space<vmem>>, %arg11: memref<1x256xf32, #tpu.memory_space<vmem>>, %arg12: memref<256x128xbf16, #tpu.memory_space<vmem>>, %arg13: memref<1x128xf32, #tpu.memory_space<vmem>>, %arg14: memref<2x128xf32, #tpu.memory_space<vmem>>, %arg15: memref<32x512xf32, #tpu.memory_space<vmem>>, %arg16: memref<8x576xf32, #tpu.memory_space<vmem>>, %arg17: memref<2x256xf32, #tpu.memory_space<vmem>>) attributes {dimension_semantics = [#tpu.dimension_semantics<arbitrary>], iteration_bounds = array<i64: 1>, scalar_prefetch = 0 : i64, scratch_operands = 3 : i64, tpu.core_type = #tpu.core_type<tc>, window_params = [{pipeline_mode = #tpu.pipeline_mode<synchronous>, transform_indices = @transform_0, window_bounds = array<i64: 256, 256>}, {pipeline_mode = #tpu.pipeline_mode<synchronous>, transform_indices = @transform_1, window_bounds = array<i64: 256, 32>}, {pipeline_mode = #tpu.pipeline_mode<synchronous>, transform_indices = @transform_2, window_bounds = array<i64: 1, 32>}, {pipeline_mode = #tpu.pipeline_mode<synchronous>, transform_indices = @transform_3, window_bounds = array<i64: 512, 256>}, {pipeline_mode = #tpu.pipeline_mode<synchronous>, transform_indices = @transform_4, window_bounds = array<i64: 512, 64>}, {pipeline_mode = #tpu.pipeline_mode<synchronous>, transform_indices = @transform_5, window_bounds = array<i64: 1, 64>}, {pipeline_mode = #tpu.pipeline_mode<synchronous>, transform_indices = @transform_6, window_bounds = array<i64: 72, 32>}, {pipeline_mode = #tpu.pipeline_mode<synchronous>, transform_indices = @transform_7, window_bounds = array<i64: 576, 64>}, {pipeline_mode = #tpu.pipeline_mode<synchronous>, transform_indices = @transform_8, window_bounds = array<i64: 1, 64>}, {pipeline_mode = #tpu.pipeline_mode<synchronous>, transform_indices = @transform_9, window_bounds = array<i64: 256, 256>}, {pipeline_mode = #tpu.pipeline_mode<synchronous>, transform_indices = @transform_10, window_bounds = array<i64: 1, 256>}, {pipeline_mode = #tpu.pipeline_mode<synchronous>, transform_indices = @transform_11, window_bounds = array<i64: 256, 128>}, {pipeline_mode = #tpu.pipeline_mode<synchronous>, transform_indices = @transform_12, window_bounds = array<i64: 1, 128>}, {pipeline_mode = #tpu.pipeline_mode<synchronous>, transform_indices = @transform_13, window_bounds = array<i64: 2, 128>}]} {
    %c0 = arith.constant 0 : index
    %c0_0 = arith.constant 0 : index
    %0 = vector.load %arg1[%c0, %c0_0] : memref<256x256xbf16, #tpu.memory_space<vmem>>, vector<256x256xbf16>
    %c0_1 = arith.constant 0 : index
    %c0_2 = arith.constant 0 : index
    %1 = vector.load %arg2[%c0_1, %c0_2] : memref<256x32xbf16, #tpu.memory_space<vmem>>, vector<256x32xbf16>
    %cst = arith.constant dense<0.000000e+00> : vector<256x32xf32>
    %2 = tpu.matmul %0, %1, %cst {dimension_numbers = #tpu.dot_dimension_numbers<[1], [0], [0], [1], [0, 0, 1, 1], [], []>} : vector<256x256xbf16>, vector<256x32xbf16>, vector<256x32xf32> -> vector<256x32xf32>
    %c0_3 = arith.constant 0 : index
    %c0_4 = arith.constant 0 : index
    %3 = vector.load %arg3[%c0_3, %c0_4] : memref<1x32xf32, #tpu.memory_space<vmem>>, vector<1x32xf32>
    %4 = vector.broadcast %3 : vector<1x32xf32> to vector<256x32xf32>
    %5 = arith.addf %2, %4 : vector<256x32xf32>
    %cst_5 = arith.constant 0.000000e+00 : f32
    %6 = vector.broadcast %cst_5 : f32 to vector<256x32xf32>
    %7 = arith.maximumf %5, %6 : vector<256x32xf32>
    %8 = tpu.iota {dimensions = array<i32: 0>} : vector<256x32xi32>
    %c242_i32 = arith.constant 242 : i32
    %9 = vector.broadcast %c242_i32 : i32 to vector<256x32xi32>
    %10 = arith.cmpi slt, %8, %9 : vector<256x32xi32>
    %cst_6 = arith.constant 0.000000e+00 : f32
    %11 = vector.broadcast %cst_6 : f32 to vector<256x32xf32>
    %12 = arith.select %10, %7, %11 : vector<256x32xi1>, vector<256x32xf32>
    %c0_7 = arith.constant 0 : index
    %c0_8 = arith.constant 0 : index
    %13 = vector.load %arg4[%c0_7, %c0_8] : memref<512x256xbf16, #tpu.memory_space<vmem>>, vector<512x256xbf16>
    %14 = arith.truncf %12 : vector<256x32xf32> to vector<256x32xbf16>
    %cst_9 = arith.constant dense<0.000000e+00> : vector<512x32xf32>
    %15 = tpu.matmul %13, %14, %cst_9 {dimension_numbers = #tpu.dot_dimension_numbers<[1], [0], [0], [1], [0, 0, 1, 1], [], []>} : vector<512x256xbf16>, vector<256x32xbf16>, vector<512x32xf32> -> vector<512x32xf32>
    %16 = vector.extract_strided_slice %15 {offsets = [0, 0], sizes = [32, 32], strides = [1, 1]} : vector<512x32xf32> to vector<32x32xf32>
    %c0_10 = arith.constant 0 : index
    %c0_11 = arith.constant 0 : index
    %17 = vector.load %arg15[%c0_10, %c0_11] : memref<32x512xf32, #tpu.memory_space<vmem>>, vector<32x32xf32>
    tpu.vector_store %arg15[%c0_10, %c0_11], %16 {strides = array<i32>} : memref<32x512xf32, #tpu.memory_space<vmem>>, vector<32x32xf32>,
    %18 = vector.extract_strided_slice %15 {offsets = [32, 0], sizes = [32, 32], strides = [1, 1]} : vector<512x32xf32> to vector<32x32xf32>
    %c0_12 = arith.constant 0 : index
    %c32 = arith.constant 32 : index
    %19 = vector.load %arg15[%c0_12, %c32] : memref<32x512xf32, #tpu.memory_space<vmem>>, vector<32x32xf32>
    tpu.vector_store %arg15[%c0_12, %c32], %18 {strides = array<i32>} : memref<32x512xf32, #tpu.memory_space<vmem>>, vector<32x32xf32>,
    %20 = vector.extract_strided_slice %15 {offsets = [64, 0], sizes = [32, 32], strides = [1, 1]} : vector<512x32xf32> to vector<32x32xf32>
    %c0_13 = arith.constant 0 : index
    %c64 = arith.constant 64 : index
    %21 = vector.load %arg15[%c0_13, %c64] : memref<32x512xf32, #tpu.memory_space<vmem>>, vector<32x32xf32>
    tpu.vector_store %arg15[%c0_13, %c64], %20 {strides = array<i32>} : memref<32x512xf32, #tpu.memory_space<vmem>>, vector<32x32xf32>,
    %22 = vector.extract_strided_slice %15 {offsets = [96, 0], sizes = [32, 32], strides = [1, 1]} : vector<512x32xf32> to vector<32x32xf32>
    %c0_14 = arith.constant 0 : index
    %c96 = arith.constant 96 : index
    %23 = vector.load %arg15[%c0_14, %c96] : memref<32x512xf32, #tpu.memory_space<vmem>>, vector<32x32xf32>
    tpu.vector_store %arg15[%c0_14, %c96], %22 {strides = array<i32>} : memref<32x512xf32, #tpu.memory_space<vmem>>, vector<32x32xf32>,
    %24 = vector.extract_strided_slice %15 {offsets = [128, 0], sizes = [32, 32], strides = [1, 1]} : vector<512x32xf32> to vector<32x32xf32>
    %c0_15 = arith.constant 0 : index
    %c128 = arith.constant 128 : index
    %25 = vector.load %arg15[%c0_15, %c128] : memref<32x512xf32, #tpu.memory_space<vmem>>, vector<32x32xf32>
    tpu.vector_store %arg15[%c0_15, %c128], %24 {strides = array<i32>} : memref<32x512xf32, #tpu.memory_space<vmem>>, vector<32x32xf32>,
    %26 = vector.extract_strided_slice %15 {offsets = [160, 0], sizes = [32, 32], strides = [1, 1]} : vector<512x32xf32> to vector<32x32xf32>
    %c0_16 = arith.constant 0 : index
    %c160 = arith.constant 160 : index
    %27 = vector.load %arg15[%c0_16, %c160] : memref<32x512xf32, #tpu.memory_space<vmem>>, vector<32x32xf32>
    tpu.vector_store %arg15[%c0_16, %c160], %26 {strides = array<i32>} : memref<32x512xf32, #tpu.memory_space<vmem>>, vector<32x32xf32>,
    %28 = vector.extract_strided_slice %15 {offsets = [192, 0], sizes = [32, 32], strides = [1, 1]} : vector<512x32xf32> to vector<32x32xf32>
    %c0_17 = arith.constant 0 : index
    %c192 = arith.constant 192 : index
    %29 = vector.load %arg15[%c0_17, %c192] : memref<32x512xf32, #tpu.memory_space<vmem>>, vector<32x32xf32>
    tpu.vector_store %arg15[%c0_17, %c192], %28 {strides = array<i32>} : memref<32x512xf32, #tpu.memory_space<vmem>>, vector<32x32xf32>,
    %30 = vector.extract_strided_slice %15 {offsets = [224, 0], sizes = [32, 32], strides = [1, 1]} : vector<512x32xf32> to vector<32x32xf32>
    %c0_18 = arith.constant 0 : index
    %c224 = arith.constant 224 : index
    %31 = vector.load %arg15[%c0_18, %c224] : memref<32x512xf32, #tpu.memory_space<vmem>>, vector<32x32xf32>
    tpu.vector_store %arg15[%c0_18, %c224], %30 {strides = array<i32>} : memref<32x512xf32, #tpu.memory_space<vmem>>, vector<32x32xf32>,
    %32 = vector.extract_strided_slice %15 {offsets = [256, 0], sizes = [32, 32], strides = [1, 1]} : vector<512x32xf32> to vector<32x32xf32>
    %c0_19 = arith.constant 0 : index
    %c256 = arith.constant 256 : index
    %33 = vector.load %arg15[%c0_19, %c256] : memref<32x512xf32, #tpu.memory_space<vmem>>, vector<32x32xf32>
    tpu.vector_store %arg15[%c0_19, %c256], %32 {strides = array<i32>} : memref<32x512xf32, #tpu.memory_space<vmem>>, vector<32x32xf32>,
    %34 = vector.extract_strided_slice %15 {offsets = [288, 0], sizes = [32, 32], strides = [1, 1]} : vector<512x32xf32> to vector<32x32xf32>
    %c0_20 = arith.constant 0 : index
    %c288 = arith.constant 288 : index
    %35 = vector.load %arg15[%c0_20, %c288] : memref<32x512xf32, #tpu.memory_space<vmem>>, vector<32x32xf32>
    tpu.vector_store %arg15[%c0_20, %c288], %34 {strides = array<i32>} : memref<32x512xf32, #tpu.memory_space<vmem>>, vector<32x32xf32>,
    %36 = vector.extract_strided_slice %15 {offsets = [320, 0], sizes = [32, 32], strides = [1, 1]} : vector<512x32xf32> to vector<32x32xf32>
    %c0_21 = arith.constant 0 : index
    %c320 = arith.constant 320 : index
    %37 = vector.load %arg15[%c0_21, %c320] : memref<32x512xf32, #tpu.memory_space<vmem>>, vector<32x32xf32>
    tpu.vector_store %arg15[%c0_21, %c320], %36 {strides = array<i32>} : memref<32x512xf32, #tpu.memory_space<vmem>>, vector<32x32xf32>,
    %38 = vector.extract_strided_slice %15 {offsets = [352, 0], sizes = [32, 32], strides = [1, 1]} : vector<512x32xf32> to vector<32x32xf32>
    %c0_22 = arith.constant 0 : index
    %c352 = arith.constant 352 : index
    %39 = vector.load %arg15[%c0_22, %c352] : memref<32x512xf32, #tpu.memory_space<vmem>>, vector<32x32xf32>
    tpu.vector_store %arg15[%c0_22, %c352], %38 {strides = array<i32>} : memref<32x512xf32, #tpu.memory_space<vmem>>, vector<32x32xf32>,
    %40 = vector.extract_strided_slice %15 {offsets = [384, 0], sizes = [32, 32], strides = [1, 1]} : vector<512x32xf32> to vector<32x32xf32>
    %c0_23 = arith.constant 0 : index
    %c384 = arith.constant 384 : index
    %41 = vector.load %arg15[%c0_23, %c384] : memref<32x512xf32, #tpu.memory_space<vmem>>, vector<32x32xf32>
    tpu.vector_store %arg15[%c0_23, %c384], %40 {strides = array<i32>} : memref<32x512xf32, #tpu.memory_space<vmem>>, vector<32x32xf32>,
    %42 = vector.extract_strided_slice %15 {offsets = [416, 0], sizes = [32, 32], strides = [1, 1]} : vector<512x32xf32> to vector<32x32xf32>
    %c0_24 = arith.constant 0 : index
    %c416 = arith.constant 416 : index
    %43 = vector.load %arg15[%c0_24, %c416] : memref<32x512xf32, #tpu.memory_space<vmem>>, vector<32x32xf32>
    tpu.vector_store %arg15[%c0_24, %c416], %42 {strides = array<i32>} : memref<32x512xf32, #tpu.memory_space<vmem>>, vector<32x32xf32>,
    %44 = vector.extract_strided_slice %15 {offsets = [448, 0], sizes = [32, 32], strides = [1, 1]} : vector<512x32xf32> to vector<32x32xf32>
    %c0_25 = arith.constant 0 : index
    %c448 = arith.constant 448 : index
    %45 = vector.load %arg15[%c0_25, %c448] : memref<32x512xf32, #tpu.memory_space<vmem>>, vector<32x32xf32>
    tpu.vector_store %arg15[%c0_25, %c448], %44 {strides = array<i32>} : memref<32x512xf32, #tpu.memory_space<vmem>>, vector<32x32xf32>,
    %46 = vector.extract_strided_slice %15 {offsets = [480, 0], sizes = [32, 32], strides = [1, 1]} : vector<512x32xf32> to vector<32x32xf32>
    %c0_26 = arith.constant 0 : index
    %c480 = arith.constant 480 : index
    %47 = vector.load %arg15[%c0_26, %c480] : memref<32x512xf32, #tpu.memory_space<vmem>>, vector<32x32xf32>
    tpu.vector_store %arg15[%c0_26, %c480], %46 {strides = array<i32>} : memref<32x512xf32, #tpu.memory_space<vmem>>, vector<32x32xf32>,
    %c0_27 = arith.constant 0 : index
    %c0_28 = arith.constant 0 : index
    %48 = vector.load %arg15[%c0_27, %c0_28] : memref<32x512xf32, #tpu.memory_space<vmem>>, vector<32x512xf32>
    %c0_29 = arith.constant 0 : index
    %c0_30 = arith.constant 0 : index
    %49 = vector.load %arg5[%c0_29, %c0_30] : memref<512x64xbf16, #tpu.memory_space<vmem>>, vector<512x64xbf16>
    %50 = arith.truncf %48 : vector<32x512xf32> to vector<32x512xbf16>
    %cst_31 = arith.constant dense<0.000000e+00> : vector<32x64xf32>
    %51 = tpu.matmul %50, %49, %cst_31 {dimension_numbers = #tpu.dot_dimension_numbers<[1], [0], [0], [1], [0, 0, 1, 1], [], []>} : vector<32x512xbf16>, vector<512x64xbf16>, vector<32x64xf32> -> vector<32x64xf32>
    %c0_32 = arith.constant 0 : index
    %c0_33 = arith.constant 0 : index
    %52 = vector.load %arg6[%c0_32, %c0_33] : memref<1x64xf32, #tpu.memory_space<vmem>>, vector<1x64xf32>
    %53 = vector.broadcast %52 : vector<1x64xf32> to vector<32x64xf32>
    %54 = arith.addf %51, %53 : vector<32x64xf32>
    %cst_34 = arith.constant 0.000000e+00 : f32
    %55 = vector.broadcast %cst_34 : f32 to vector<32x64xf32>
    %56 = arith.maximumf %54, %55 : vector<32x64xf32>
    %c0_35 = arith.constant 0 : index
    %c0_36 = arith.constant 0 : index
    %57 = vector.load %arg7[%c0_35, %c0_36] : memref<72x32xbf16, #tpu.memory_space<vmem>>, vector<72x32xbf16>
    %58 = arith.truncf %56 : vector<32x64xf32> to vector<32x64xbf16>
    %cst_37 = arith.constant dense<0.000000e+00> : vector<72x64xf32>
    %59 = tpu.matmul %57, %58, %cst_37 {dimension_numbers = #tpu.dot_dimension_numbers<[1], [0], [0], [1], [0, 0, 1, 1], [], []>} : vector<72x32xbf16>, vector<32x64xbf16>, vector<72x64xf32> -> vector<72x64xf32>
    %60 = vector.extract_strided_slice %59 {offsets = [0, 0], sizes = [8, 64], strides = [1, 1]} : vector<72x64xf32> to vector<8x64xf32>
    %c0_38 = arith.constant 0 : index
    %c0_39 = arith.constant 0 : index
    %61 = vector.load %arg16[%c0_38, %c0_39] : memref<8x576xf32, #tpu.memory_space<vmem>>, vector<8x64xf32>
    tpu.vector_store %arg16[%c0_38, %c0_39], %60 {strides = array<i32>} : memref<8x576xf32, #tpu.memory_space<vmem>>, vector<8x64xf32>,
    %62 = vector.extract_strided_slice %59 {offsets = [8, 0], sizes = [8, 64], strides = [1, 1]} : vector<72x64xf32> to vector<8x64xf32>
    %c0_40 = arith.constant 0 : index
    %c64_41 = arith.constant 64 : index
    %63 = vector.load %arg16[%c0_40, %c64_41] : memref<8x576xf32, #tpu.memory_space<vmem>>, vector<8x64xf32>
    tpu.vector_store %arg16[%c0_40, %c64_41], %62 {strides = array<i32>} : memref<8x576xf32, #tpu.memory_space<vmem>>, vector<8x64xf32>,
    %64 = vector.extract_strided_slice %59 {offsets = [16, 0], sizes = [8, 64], strides = [1, 1]} : vector<72x64xf32> to vector<8x64xf32>
    %c0_42 = arith.constant 0 : index
    %c128_43 = arith.constant 128 : index
    %65 = vector.load %arg16[%c0_42, %c128_43] : memref<8x576xf32, #tpu.memory_space<vmem>>, vector<8x64xf32>
    tpu.vector_store %arg16[%c0_42, %c128_43], %64 {strides = array<i32>} : memref<8x576xf32, #tpu.memory_space<vmem>>, vector<8x64xf32>,
    %66 = vector.extract_strided_slice %59 {offsets = [24, 0], sizes = [8, 64], strides = [1, 1]} : vector<72x64xf32> to vector<8x64xf32>
    %c0_44 = arith.constant 0 : index
    %c192_45 = arith.constant 192 : index
    %67 = vector.load %arg16[%c0_44, %c192_45] : memref<8x576xf32, #tpu.memory_space<vmem>>, vector<8x64xf32>
    tpu.vector_store %arg16[%c0_44, %c192_45], %66 {strides = array<i32>} : memref<8x576xf32, #tpu.memory_space<vmem>>, vector<8x64xf32>,
    %68 = vector.extract_strided_slice %59 {offsets = [32, 0], sizes = [8, 64], strides = [1, 1]} : vector<72x64xf32> to vector<8x64xf32>
    %c0_46 = arith.constant 0 : index
    %c256_47 = arith.constant 256 : index
    %69 = vector.load %arg16[%c0_46, %c256_47] : memref<8x576xf32, #tpu.memory_space<vmem>>, vector<8x64xf32>
    tpu.vector_store %arg16[%c0_46, %c256_47], %68 {strides = array<i32>} : memref<8x576xf32, #tpu.memory_space<vmem>>, vector<8x64xf32>,
    %70 = vector.extract_strided_slice %59 {offsets = [40, 0], sizes = [8, 64], strides = [1, 1]} : vector<72x64xf32> to vector<8x64xf32>
    %c0_48 = arith.constant 0 : index
    %c320_49 = arith.constant 320 : index
    %71 = vector.load %arg16[%c0_48, %c320_49] : memref<8x576xf32, #tpu.memory_space<vmem>>, vector<8x64xf32>
    tpu.vector_store %arg16[%c0_48, %c320_49], %70 {strides = array<i32>} : memref<8x576xf32, #tpu.memory_space<vmem>>, vector<8x64xf32>,
    %72 = vector.extract_strided_slice %59 {offsets = [48, 0], sizes = [8, 64], strides = [1, 1]} : vector<72x64xf32> to vector<8x64xf32>
    %c0_50 = arith.constant 0 : index
    %c384_51 = arith.constant 384 : index
    %73 = vector.load %arg16[%c0_50, %c384_51] : memref<8x576xf32, #tpu.memory_space<vmem>>, vector<8x64xf32>
    tpu.vector_store %arg16[%c0_50, %c384_51], %72 {strides = array<i32>} : memref<8x576xf32, #tpu.memory_space<vmem>>, vector<8x64xf32>,
    %74 = vector.extract_strided_slice %59 {offsets = [56, 0], sizes = [8, 64], strides = [1, 1]} : vector<72x64xf32> to vector<8x64xf32>
    %c0_52 = arith.constant 0 : index
    %c448_53 = arith.constant 448 : index
    %75 = vector.load %arg16[%c0_52, %c448_53] : memref<8x576xf32, #tpu.memory_space<vmem>>, vector<8x64xf32>
    tpu.vector_store %arg16[%c0_52, %c448_53], %74 {strides = array<i32>} : memref<8x576xf32, #tpu.memory_space<vmem>>, vector<8x64xf32>,
    %76 = vector.extract_strided_slice %59 {offsets = [64, 0], sizes = [8, 64], strides = [1, 1]} : vector<72x64xf32> to vector<8x64xf32>
    %c0_54 = arith.constant 0 : index
    %c512 = arith.constant 512 : index
    %77 = vector.load %arg16[%c0_54, %c512] : memref<8x576xf32, #tpu.memory_space<vmem>>, vector<8x64xf32>
    tpu.vector_store %arg16[%c0_54, %c512], %76 {strides = array<i32>} : memref<8x576xf32, #tpu.memory_space<vmem>>, vector<8x64xf32>,
    %c0_55 = arith.constant 0 : index
    %c0_56 = arith.constant 0 : index
    %78 = vector.load %arg16[%c0_55, %c0_56] : memref<8x576xf32, #tpu.memory_space<vmem>>, vector<8x576xf32>
    %c0_57 = arith.constant 0 : index
    %c0_58 = arith.constant 0 : index
    %79 = vector.load %arg8[%c0_57, %c0_58] : memref<576x64xbf16, #tpu.memory_space<vmem>>, vector<576x64xbf16>
    %80 = arith.truncf %78 : vector<8x576xf32> to vector<8x576xbf16>
    %cst_59 = arith.constant dense<0.000000e+00> : vector<8x64xf32>
    %81 = tpu.matmul %80, %79, %cst_59 {dimension_numbers = #tpu.dot_dimension_numbers<[1], [0], [0], [1], [0, 0, 1, 1], [], []>} : vector<8x576xbf16>, vector<576x64xbf16>, vector<8x64xf32> -> vector<8x64xf32>
    %c0_60 = arith.constant 0 : index
    %c0_61 = arith.constant 0 : index
    %82 = vector.load %arg9[%c0_60, %c0_61] : memref<1x64xf32, #tpu.memory_space<vmem>>, vector<1x64xf32>
    %83 = vector.broadcast %82 : vector<1x64xf32> to vector<8x64xf32>
    %84 = arith.addf %81, %83 : vector<8x64xf32>
    %cst_62 = arith.constant 0.000000e+00 : f32
    %85 = vector.broadcast %cst_62 : f32 to vector<8x64xf32>
    %86 = arith.maximumf %84, %85 : vector<8x64xf32>
    %87 = vector.extract_strided_slice %86 {offsets = [0, 0], sizes = [1, 64], strides = [1, 1]} : vector<8x64xf32> to vector<1x64xf32>
    %c0_63 = arith.constant 0 : index
    %c0_64 = arith.constant 0 : index
    %88 = vector.load %arg17[%c0_63, %c0_64] : memref<2x256xf32, #tpu.memory_space<vmem>>, vector<1x64xf32>
    tpu.vector_store %arg17[%c0_63, %c0_64], %87 {strides = array<i32>} : memref<2x256xf32, #tpu.memory_space<vmem>>, vector<1x64xf32>,
    %89 = vector.extract_strided_slice %86 {offsets = [1, 0], sizes = [1, 64], strides = [1, 1]} : vector<8x64xf32> to vector<1x64xf32>
    %c0_65 = arith.constant 0 : index
    %c64_66 = arith.constant 64 : index
    %90 = vector.load %arg17[%c0_65, %c64_66] : memref<2x256xf32, #tpu.memory_space<vmem>>, vector<1x64xf32>
    tpu.vector_store %arg17[%c0_65, %c64_66], %89 {strides = array<i32>} : memref<2x256xf32, #tpu.memory_space<vmem>>, vector<1x64xf32>,
    %91 = vector.extract_strided_slice %86 {offsets = [2, 0], sizes = [1, 64], strides = [1, 1]} : vector<8x64xf32> to vector<1x64xf32>
    %c0_67 = arith.constant 0 : index
    %c128_68 = arith.constant 128 : index
    %92 = vector.load %arg17[%c0_67, %c128_68] : memref<2x256xf32, #tpu.memory_space<vmem>>, vector<1x64xf32>
    tpu.vector_store %arg17[%c0_67, %c128_68], %91 {strides = array<i32>} : memref<2x256xf32, #tpu.memory_space<vmem>>, vector<1x64xf32>,
    %93 = vector.extract_strided_slice %86 {offsets = [3, 0], sizes = [1, 64], strides = [1, 1]} : vector<8x64xf32> to vector<1x64xf32>
    %c0_69 = arith.constant 0 : index
    %c192_70 = arith.constant 192 : index
    %94 = vector.load %arg17[%c0_69, %c192_70] : memref<2x256xf32, #tpu.memory_space<vmem>>, vector<1x64xf32>
    tpu.vector_store %arg17[%c0_69, %c192_70], %93 {strides = array<i32>} : memref<2x256xf32, #tpu.memory_space<vmem>>, vector<1x64xf32>,
    %95 = vector.extract_strided_slice %86 {offsets = [4, 0], sizes = [1, 64], strides = [1, 1]} : vector<8x64xf32> to vector<1x64xf32>
    %c1 = arith.constant 1 : index
    %c0_71 = arith.constant 0 : index
    %96 = vector.load %arg17[%c1, %c0_71] : memref<2x256xf32, #tpu.memory_space<vmem>>, vector<1x64xf32>
    tpu.vector_store %arg17[%c1, %c0_71], %95 {strides = array<i32>} : memref<2x256xf32, #tpu.memory_space<vmem>>, vector<1x64xf32>,
    %97 = vector.extract_strided_slice %86 {offsets = [5, 0], sizes = [1, 64], strides = [1, 1]} : vector<8x64xf32> to vector<1x64xf32>
    %c1_72 = arith.constant 1 : index
    %c64_73 = arith.constant 64 : index
    %98 = vector.load %arg17[%c1_72, %c64_73] : memref<2x256xf32, #tpu.memory_space<vmem>>, vector<1x64xf32>
    tpu.vector_store %arg17[%c1_72, %c64_73], %97 {strides = array<i32>} : memref<2x256xf32, #tpu.memory_space<vmem>>, vector<1x64xf32>,
    %99 = vector.extract_strided_slice %86 {offsets = [6, 0], sizes = [1, 64], strides = [1, 1]} : vector<8x64xf32> to vector<1x64xf32>
    %c1_74 = arith.constant 1 : index
    %c128_75 = arith.constant 128 : index
    %100 = vector.load %arg17[%c1_74, %c128_75] : memref<2x256xf32, #tpu.memory_space<vmem>>, vector<1x64xf32>
    tpu.vector_store %arg17[%c1_74, %c128_75], %99 {strides = array<i32>} : memref<2x256xf32, #tpu.memory_space<vmem>>, vector<1x64xf32>,
    %101 = vector.extract_strided_slice %86 {offsets = [7, 0], sizes = [1, 64], strides = [1, 1]} : vector<8x64xf32> to vector<1x64xf32>
    %c1_76 = arith.constant 1 : index
    %c192_77 = arith.constant 192 : index
    %102 = vector.load %arg17[%c1_76, %c192_77] : memref<2x256xf32, #tpu.memory_space<vmem>>, vector<1x64xf32>
    tpu.vector_store %arg17[%c1_76, %c192_77], %101 {strides = array<i32>} : memref<2x256xf32, #tpu.memory_space<vmem>>, vector<1x64xf32>,
    %c0_78 = arith.constant 0 : index
    %c0_79 = arith.constant 0 : index
    %103 = vector.load %arg17[%c0_78, %c0_79] : memref<2x256xf32, #tpu.memory_space<vmem>>, vector<2x256xf32>
    %c0_80 = arith.constant 0 : index
    %c0_81 = arith.constant 0 : index
    %104 = vector.load %arg10[%c0_80, %c0_81] : memref<256x256xbf16, #tpu.memory_space<vmem>>, vector<256x256xbf16>
    %105 = arith.truncf %103 : vector<2x256xf32> to vector<2x256xbf16>
    %cst_82 = arith.constant dense<0.000000e+00> : vector<2x256xf32>
    %106 = tpu.matmul %105, %104, %cst_82 {dimension_numbers = #tpu.dot_dimension_numbers<[1], [0], [0], [1], [0, 0, 1, 1], [], []>} : vector<2x256xbf16>, vector<256x256xbf16>, vector<2x256xf32> -> vector<2x256xf32>
    %c0_83 = arith.constant 0 : index
    %c0_84 = arith.constant 0 : index
    %107 = vector.load %arg11[%c0_83, %c0_84] : memref<1x256xf32, #tpu.memory_space<vmem>>, vector<1x256xf32>
    %108 = vector.broadcast %107 : vector<1x256xf32> to vector<2x256xf32>
    %109 = arith.addf %106, %108 : vector<2x256xf32>
    %cst_85 = arith.constant 0.000000e+00 : f32
    %110 = vector.broadcast %cst_85 : f32 to vector<2x256xf32>
    %111 = arith.cmpf ogt, %109, %110 : vector<2x256xf32>
    %cst_86 = arith.constant 0.00999999977 : f32
    %112 = vector.broadcast %cst_86 : f32 to vector<2x256xf32>
    %113 = arith.mulf %112, %109 : vector<2x256xf32>
    %114 = arith.select %111, %109, %113 : vector<2x256xi1>, vector<2x256xf32>
    %c0_87 = arith.constant 0 : index
    %c0_88 = arith.constant 0 : index
    %115 = vector.load %arg12[%c0_87, %c0_88] : memref<256x128xbf16, #tpu.memory_space<vmem>>, vector<256x128xbf16>
    %116 = arith.truncf %114 : vector<2x256xf32> to vector<2x256xbf16>
    %cst_89 = arith.constant dense<0.000000e+00> : vector<2x128xf32>
    %117 = tpu.matmul %116, %115, %cst_89 {dimension_numbers = #tpu.dot_dimension_numbers<[1], [0], [0], [1], [0, 0, 1, 1], [], []>} : vector<2x256xbf16>, vector<256x128xbf16>, vector<2x128xf32> -> vector<2x128xf32>
    %c0_90 = arith.constant 0 : index
    %c0_91 = arith.constant 0 : index
    %118 = vector.load %arg13[%c0_90, %c0_91] : memref<1x128xf32, #tpu.memory_space<vmem>>, vector<1x128xf32>
    %119 = vector.broadcast %118 : vector<1x128xf32> to vector<2x128xf32>
    %120 = arith.addf %117, %119 : vector<2x128xf32>
    %121 = tpu.iota {dimensions = array<i32: 1>} : vector<2x128xi32>
    %c6_i32 = arith.constant 6 : i32
    %122 = vector.broadcast %c6_i32 : i32 to vector<2x128xi32>
    %123 = arith.cmpi slt, %121, %122 : vector<2x128xi32>
    %cst_92 = arith.constant 0.000000e+00 : f32
    %124 = vector.broadcast %cst_92 : f32 to vector<2x128xf32>
    %125 = arith.select %123, %120, %124 : vector<2x128xi1>, vector<2x128xf32>
    %cst_93 = arith.constant dense<0.000000e+00> : vector<2xf32>
    %126 = vector.multi_reduction <add>, %125, %cst_93 [1] : vector<2x128xf32> to vector<2xf32>
    %127 = vector.shape_cast %126 : vector<2xf32> to vector<2x1xf32>
    %cst_94 = arith.constant 0.166666672 : f32
    %128 = vector.broadcast %cst_94 : f32 to vector<2x1xf32>
    %129 = arith.mulf %127, %128 : vector<2x1xf32>
    %c6_i32_95 = arith.constant 6 : i32
    %130 = vector.broadcast %c6_i32_95 : i32 to vector<2x128xi32>
    %131 = arith.cmpi eq, %121, %130 : vector<2x128xi32>
    %cst_96 = arith.constant 0.000000e+00 : f32
    %132 = vector.broadcast %cst_96 : f32 to vector<2x128xf32>
    %133 = arith.select %131, %120, %132 : vector<2x128xi1>, vector<2x128xf32>
    %cst_97 = arith.constant dense<0.000000e+00> : vector<2xf32>
    %134 = vector.multi_reduction <add>, %133, %cst_97 [1] : vector<2x128xf32> to vector<2xf32>
    %135 = vector.shape_cast %134 : vector<2xf32> to vector<2x1xf32>
    %136 = vector.broadcast %135 : vector<2x1xf32> to vector<2x128xf32>
    %137 = arith.addf %120, %136 : vector<2x128xf32>
    %138 = vector.broadcast %129 : vector<2x1xf32> to vector<2x128xf32>
    %139 = arith.subf %137, %138 : vector<2x128xf32>
    %c0_98 = arith.constant 0 : index
    %c0_99 = arith.constant 0 : index
    %140 = vector.load %arg14[%c0_98, %c0_99] : memref<2x128xf32, #tpu.memory_space<vmem>>, vector<2x128xf32>
    tpu.vector_store %arg14[%c0_98, %c0_99], %139 {strides = array<i32>} : memref<2x128xf32, #tpu.memory_space<vmem>>, vector<2x128xf32>,
    return
  }
  func.func @transform_0(%arg0: i32) -> (i32, i32) {
    %c0_i32 = arith.constant 0 : i32
    %c0_i32_0 = arith.constant 0 : i32
    %c0_i32_1 = arith.constant 0 : i32
    return %c0_i32, %c0_i32_0 : i32, i32
  }
  func.func @transform_1(%arg0: i32) -> (i32, i32) {
    %c0_i32 = arith.constant 0 : i32
    %c0_i32_0 = arith.constant 0 : i32
    %c0_i32_1 = arith.constant 0 : i32
    return %c0_i32, %c0_i32_0 : i32, i32
  }
  func.func @transform_2(%arg0: i32) -> (i32, i32) {
    %c0_i32 = arith.constant 0 : i32
    %c0_i32_0 = arith.constant 0 : i32
    %c0_i32_1 = arith.constant 0 : i32
    return %c0_i32, %c0_i32_0 : i32, i32
  }
  func.func @transform_3(%arg0: i32) -> (i32, i32) {
    %c0_i32 = arith.constant 0 : i32
    %c0_i32_0 = arith.constant 0 : i32
    %c0_i32_1 = arith.constant 0 : i32
    return %c0_i32, %c0_i32_0 : i32, i32
  }
  func.func @transform_4(%arg0: i32) -> (i32, i32) {
    %c0_i32 = arith.constant 0 : i32
    %c0_i32_0 = arith.constant 0 : i32
    %c0_i32_1 = arith.constant 0 : i32
    return %c0_i32, %c0_i32_0 : i32, i32
  }
  func.func @transform_5(%arg0: i32) -> (i32, i32) {
    %c0_i32 = arith.constant 0 : i32
    %c0_i32_0 = arith.constant 0 : i32
    %c0_i32_1 = arith.constant 0 : i32
    return %c0_i32, %c0_i32_0 : i32, i32
  }
  func.func @transform_6(%arg0: i32) -> (i32, i32) {
    %c0_i32 = arith.constant 0 : i32
    %c0_i32_0 = arith.constant 0 : i32
    %c0_i32_1 = arith.constant 0 : i32
    return %c0_i32, %c0_i32_0 : i32, i32
  }
  func.func @transform_7(%arg0: i32) -> (i32, i32) {
    %c0_i32 = arith.constant 0 : i32
    %c0_i32_0 = arith.constant 0 : i32
    %c0_i32_1 = arith.constant 0 : i32
    return %c0_i32, %c0_i32_0 : i32, i32
  }
  func.func @transform_8(%arg0: i32) -> (i32, i32) {
    %c0_i32 = arith.constant 0 : i32
    %c0_i32_0 = arith.constant 0 : i32
    %c0_i32_1 = arith.constant 0 : i32
    return %c0_i32, %c0_i32_0 : i32, i32
  }
  func.func @transform_9(%arg0: i32) -> (i32, i32) {
    %c0_i32 = arith.constant 0 : i32
    %c0_i32_0 = arith.constant 0 : i32
    %c0_i32_1 = arith.constant 0 : i32
    return %c0_i32, %c0_i32_0 : i32, i32
  }
  func.func @transform_10(%arg0: i32) -> (i32, i32) {
    %c0_i32 = arith.constant 0 : i32
    %c0_i32_0 = arith.constant 0 : i32
    %c0_i32_1 = arith.constant 0 : i32
    return %c0_i32, %c0_i32_0 : i32, i32
  }
  func.func @transform_11(%arg0: i32) -> (i32, i32) {
    %c0_i32 = arith.constant 0 : i32
    %c0_i32_0 = arith.constant 0 : i32
    %c0_i32_1 = arith.constant 0 : i32
    return %c0_i32, %c0_i32_0 : i32, i32
  }
  func.func @transform_12(%arg0: i32) -> (i32, i32) {
    %c0_i32 = arith.constant 0 : i32
    %c0_i32_0 = arith.constant 0 : i32
    %c0_i32_1 = arith.constant 0 : i32
    return %c0_i32, %c0_i32_0 : i32, i32
  }
  func.func @transform_13(%arg0: i32) -> (i32, i32) {
    %c0_i32 = arith.constant 0 : i32
    %c0_i32_0 = arith.constant 0 : i32
    %c0_i32_1 = arith.constant 0 : i32
    return %c0_i32, %c0_i32_0 : i32, i32
  }
}

</mosaic_0001>

<bundles_post_ra>
// kernel: duelcnn_forward.1
= control target key start
LH: loop header
LB: loop body
LE: loop exit
PB: predicated region body
PF: predicated region fallthrough
CT: control target
= control target key end

     0   :  { %s5023_s0 = inlined_call_operand.vmem [shape: bf16[256,256], index: 0, kind: input, shape index: {}]   ;;  %s5024_s1 = inlined_call_operand.vmem [shape: bf16[256,32], index: 1, kind: input, shape index: {}]   ;;  %s5025_s2 = inlined_call_operand.vmem [shape: f32[1,32], index: 2, kind: input, shape index: {}]   ;;  %s5026_s3 = inlined_call_operand.vmem [shape: bf16[512,256], index: 3, kind: input, shape index: {}]   ;;  %s5027_s4 = inlined_call_operand.vmem [shape: bf16[512,64], index: 4, kind: input, shape index: {}]   ;;  %s5028_s5 = inlined_call_operand.vmem [shape: f32[1,64], index: 5, kind: input, shape index: {}]   ;;  %s5029_s6 = inlined_call_operand.vmem [shape: bf16[72,32], index: 6, kind: input, shape index: {}]   ;;  %s5030_s7 = inlined_call_operand.vmem [shape: bf16[576,64], index: 7, kind: input, shape index: {}]   ;;  %s5031_s8 = inlined_call_operand.vmem [shape: f32[1,64], index: 8, kind: input, shape index: {}]   ;;  %s5032_s9 = inlined_call_operand.vmem [shape: bf16[256,256], index: 9, kind: input, shape index: {}]   ;;  %s5033_s10 = inlined_call_operand.vmem [shape: f32[1,256], index: 10, kind: input, shape index: {}]   ;;  %s5034_s11 = inlined_call_operand.vmem [shape: bf16[256,128], index: 11, kind: input, shape index: {}]   ;;  %s5035_s12 = inlined_call_operand.vmem [shape: f32[1,128], index: 12, kind: input, shape index: {}]   ;;  %s5036_s13 = inlined_call_operand.hbm [shape: f32[2,128], index: 13, kind: output, shape index: {}]  }
   0x1   :  { %v3644_v0 = vld [vmem:[%s5024_s1 + $0x78] sm:$0xff]   ;;  %v3646_v2 = vld [vmem:[%s5024_s1 + $0x70] sm:$0xff]   ;;  %v3648_v4 = vld [vmem:[%s5024_s1 + $0x68] sm:$0xff]  }
   0x2   :  { %v3645_v1 = vld [vmem:[%s5024_s1 + $0x38] sm:$0xff]   ;;  %3353 = vmatprep.subr.bf16.mxu0 %v3644_v0  ;;  %v3647_v3 = vld [vmem:[%s5024_s1 + $0x30] sm:$0xff]   ;;  %v3649_v5 = vld [vmem:[%s5024_s1 + $0x28] sm:$0xff]  }
   0x3   :  { %3354 = vmatpush3.bf16.msra.mxu0 %v3645_v1  ;;  %v3650_v6 = vld [vmem:[%s5024_s1 + $0x60] sm:$0xff]   ;;  %v3652_v8 = vld [vmem:[%s5024_s1 + $0x58] sm:$0xff]   ;;  %v3654_v10 = vld [vmem:[%s5024_s1 + $0x50] sm:$0xff]  }
   0x4   :  { %3355 = vmatprep.subr.bf16.mxu0 %v3646_v2  ;;  %v3651_v7 = vld [vmem:[%s5024_s1 + $0x20] sm:$0xff]   ;;  %v3653_v9 = vld [vmem:[%s5024_s1 + $0x18] sm:$0xff]   ;;  %v3655_v12 = vld [vmem:[%s5024_s1 + $0x10] sm:$0xff]  }
   0x5   :  { %v3662_v11 = vld [vmem:[%s5023_s0 + $0x4] ss:$8 sps:$4 sm:$0xff]   ;;  %v3660_v17 = vld [vmem:[%s5023_s0] ss:$8 sps:$4 sm:$0xff]   ;;  %v3663_v18 = vld [vmem:[%s5023_s0 + $0x14] ss:$8 sps:$4 sm:$0xff]  }
   0x6   :  { %405 = vmatprep.mubr.bf16.mxu0 %v3662_v11  ;;  %v3656_v13 = vld [vmem:[%s5024_s1 + $0x48] sm:$0xff]   ;;  %v3658_v15 = vld [vmem:[%s5024_s1 + $0x40] sm:$0xff]   ;;  %v3665_v19 = vld [vmem:[%s5023_s0 + $0x10] ss:$8 sps:$4 sm:$0xff]  }
   0x7   :  { %3356 = vmatpush3.bf16.msra.mxu0 %v3647_v3  ;;  %v3657_v14 = vld [vmem:[%s5024_s1 + $0x8] sm:$0xff]   ;;  %v3659_v16 = vld [vmem:[%s5024_s1] sm:$0xff]   ;;  %v3669_v22 = vld [vmem:[%s5023_s0 + $0x34] ss:$8 sps:$4 sm:$0xff]  }
   0x8   :  { %3357 = vmatprep.subr.bf16.mxu0 %v3648_v4  ;;  %v3666_v20 = vld [vmem:[%s5023_s0 + $0x24] ss:$8 sps:$4 sm:$0xff]   ;;  %v3668_v21 = vld [vmem:[%s5023_s0 + $0x20] ss:$8 sps:$4 sm:$0xff]   ;;  %v3671_v23 = vld [vmem:[%s5023_s0 + $0x30] ss:$8 sps:$4 sm:$0xff]  }
   0x9   :  { %v3672_v24 = vld [vmem:[%s5023_s0 + $0x44] ss:$8 sps:$4 sm:$0xff]   ;;  %v3674_v25 = vld [vmem:[%s5023_s0 + $0x40] ss:$8 sps:$4 sm:$0xff]   ;;  %v3675_v26 = vld [vmem:[%s5023_s0 + $0x54] ss:$8 sps:$4 sm:$0xff]  }
   0xa   :  { %v3677_v27 = vld [vmem:[%s5023_s0 + $0x50] ss:$8 sps:$4 sm:$0xff]   ;;  %v3678_v28 = vld [vmem:[%s5023_s0 + $0x64] ss:$8 sps:$4 sm:$0xff]   ;;  %v3680_v29 = vld [vmem:[%s5023_s0 + $0x60] ss:$8 sps:$4 sm:$0xff]  }
   0xb   :  { %3358 = vmatpush3.bf16.msra.mxu0 %v3649_v5  ;;  %v3681_v30 = vld [vmem:[%s5023_s0 + $0x74] ss:$8 sps:$4 sm:$0xff]   ;;  %v3683_v31 = vld [vmem:[%s5023_s0 + $0x70] ss:$8 sps:$4 sm:$0xff]   ;;  %v3684_v32 = vld [vmem:[%s5023_s0 + $0x84] ss:$8 sps:$4 sm:$0xff]  }
   0xc   :  { %3359 = vmatprep.subr.bf16.mxu0 %v3650_v6  ;;  %v3686_v33 = vld [vmem:[%s5023_s0 + $0x80] ss:$8 sps:$4 sm:$0xff]   ;;  %v3687_v34 = vld [vmem:[%s5023_s0 + $0x94] ss:$8 sps:$4 sm:$0xff]   ;;  %v3689_v35 = vld [vmem:[%s5023_s0 + $0x90] ss:$8 sps:$4 sm:$0xff]  }
   0xd   :  { %v3690_v36 = vld [vmem:[%s5023_s0 + $0xa4] ss:$8 sps:$4 sm:$0xff]   ;;  %v3692_v37 = vld [vmem:[%s5023_s0 + $0xa0] ss:$8 sps:$4 sm:$0xff]   ;;  %v3693_v38 = vld [vmem:[%s5023_s0 + $0xb4] ss:$8 sps:$4 sm:$0xff]  }
   0xe   :  { %v3695_v39 = vld [vmem:[%s5023_s0 + $0xb0] ss:$8 sps:$4 sm:$0xff]   ;;  %v3696_v40 = vld [vmem:[%s5023_s0 + $0xc4] ss:$8 sps:$4 sm:$0xff]   ;;  %v3698_v41 = vld [vmem:[%s5023_s0 + $0xc0] ss:$8 sps:$4 sm:$0xff]  }
   0xf   :  { %3360 = vmatpush3.bf16.msra.mxu0 %v3651_v7  ;;  %v3699_v42 = vld [vmem:[%s5023_s0 + $0xd4] ss:$8 sps:$4 sm:$0xff]  }
  0x10   :  { %3361 = vmatprep.subr.bf16.mxu0 %v3652_v8 }
  0x13   :  { %3362 = vmatpush3.bf16.msra.mxu0 %v3653_v9 }
  0x14   :  { %3363 = vmatprep.subr.bf16.mxu0 %v3654_v10 }
  0x17   :  { %3364 = vmatpush3.bf16.msra.mxu0 %v3655_v12 }
  0x18   :  { %3365 = vmatprep.subr.bf16.mxu0 %v3656_v13 }
  0x1b   :  { %3366 = vmatpush3.bf16.msra.mxu0 %v3657_v14 }
  0x1c   :  { %3367 = vmatprep.subr.bf16.mxu0 %v3658_v15 }
  0x1f   :  { %3368 = vmatpush3.bf16.msra.mxu0 %v3659_v16 }
  0x22   :  { %406 = vmatmul.mubr.bf16.vlgmr.msra.gmra.mxu0 %v3660_v17 }
  0x23   :  { %413 = vmatprep.mubr.bf16.mxu0 %v3663_v18 }
  0x2a   :  { %414 = vmatmul.mubr.bf16.gmra.mxu0 %v3665_v19 }
  0x2b   :  { %421 = vmatprep.mubr.bf16.mxu0 %v3666_v20 }
  0x32   :  { %422 = vmatmul.mubr.bf16.gmra.mxu0 %v3668_v21 }
  0x33   :  { %429 = vmatprep.mubr.bf16.mxu0 %v3669_v22 }
  0x3a   :  { %430 = vmatmul.mubr.bf16.gmra.mxu0 %v3671_v23 }
  0x3b   :  { %437 = vmatprep.mubr.bf16.mxu0 %v3672_v24 }
  0x42   :  { %438 = vmatmul.mubr.bf16.gmra.mxu0 %v3674_v25 }
  0x43   :  { %445 = vmatprep.mubr.bf16.mxu0 %v3675_v26 }
  0x4a   :  { %446 = vmatmul.mubr.bf16.gmra.mxu0 %v3677_v27 }
  0x4b   :  { %453 = vmatprep.mubr.bf16.mxu0 %v3678_v28 }
  0x52   :  { %454 = vmatmul.mubr.bf16.gmra.mxu0 %v3680_v29 }
  0x53   :  { %461 = vmatprep.mubr.bf16.mxu0 %v3681_v30 }
  0x5a   :  { %462 = vmatmul.mubr.bf16.gmra.mxu0 %v3683_v31 }
  0x5b   :  { %469 = vmatprep.mubr.bf16.mxu0 %v3684_v32 }
  0x62   :  { %470 = vmatmul.mubr.bf16.gmra.mxu0 %v3686_v33 }
  0x63   :  { %477 = vmatprep.mubr.bf16.mxu0 %v3687_v34 }
  0x6a   :  { %478 = vmatmul.mubr.bf16.gmra.mxu0 %v3689_v35 }
  0x6b   :  { %485 = vmatprep.mubr.bf16.mxu0 %v3690_v36 }
  0x72   :  { %486 = vmatmul.mubr.bf16.gmra.mxu0 %v3692_v37 }
  0x73   :  { %493 = vmatprep.mubr.bf16.mxu0 %v3693_v38 }
  0x7a   :  { %494 = vmatmul.mubr.bf16.gmra.mxu0 %v3695_v39 }
  0x7b   :  { %501 = vmatprep.mubr.bf16.mxu0 %v3696_v40 }
  0x7c   :  { %18 = vsyncpa [#allocation6], 0  ;;  %v3701_v43 = vld [vmem:[%s5023_s0 + $0xd0] ss:$8 sps:$4 sm:$0xff]   ;;  %v3702_v44 = vld [vmem:[%s5023_s0 + $0xe4] ss:$8 sps:$4 sm:$0xff]  }
  0x7d   :  { %v3704_v45 = vld [vmem:[%s5023_s0 + $0xe0] ss:$8 sps:$4 sm:$0xff]   ;;  %v3705_v46 = vld [vmem:[%s5023_s0 + $0xf4] ss:$8 sps:$4 sm:$0xff]   ;;  %v3707_v47 = vld [vmem:[%s5023_s0 + $0xf0] ss:$8 sps:$4 sm:$0xff]  }
  0x7e   :  { %v3961_v48 = vmov 0   ;;  %v4188_v52 = vld [vmem:[%s5025_s2] ss:$0 sm:$0xff]  ;;  %v3710_v17 = vld [vmem:[%s5026_s3 + $0x4] ss:$8 sps:$4 sm:$0xff]   ;;  %vm3962_vm1 = vmmov 1  }
  0x7f   :  { %1063 = vmatprep.subr.bf16.mxu1 %v3961_v48  ;;  %1095 = vmatprep.mubr.bf16.mxu1 %v3710_v17  ;;  %vm1352_vm3 = vcmask 261120   ;;  %s3964_s29 = smov 32   ;;  %s3965_s18 = smov 64   ;;  %vm1373_vm4 = vcmask 523520   ;;  %vm1394_vm5 = vcmask 785920   ;;  %vm1415_vm6 = vcmask 1048320  }
  0x80   :  { %s3966_s27 = smov 96   ;;  %vm3967_vm7 = vmmov 0   ;;  %vm2122_vm8 = vcmask 523264   ;;  %vm2128_vm9 = vcmask 1048064   ;;  %vm2578_vm10 = vcmask 516096  }
  0x81   :  { %vm2593_vm11 = vcmask 1040896  }
  0x82   :  { %502 = vmatmul.mubr.bf16.gmra.mxu0 %v3698_v41 }
  0x83   :  { %509 = vmatprep.mubr.bf16.mxu0 %v3699_v42 }
  0x8a   :  { %510 = vmatmul.mubr.bf16.gmra.mxu0 %v3701_v43 }
  0x8b   :  { %517 = vmatprep.mubr.bf16.mxu0 %v3702_v44 }
  0x92   :  { %518 = vmatmul.mubr.bf16.gmra.mxu0 %v3704_v45 }
  0x93   :  { %525 = vmatprep.mubr.bf16.mxu0 %v3705_v46 }
  0x9a   :  { %526 = vmatmul.mubr.bf16.gmra.mxu0 %v3707_v47 }
  0xe2   :  { %v3369_v49 = vpop.f32.mrf.mxu0 }
  0xe4   :  { %v3370_v50 = vpop.f32.mrf.mxu0 }
  0xe5   :  { %v3371_v51 = vadd.f32 %v3370_v50, %v3369_v49 }
  0xe6   :  { %v3372_v53 = vpop.f32.mrf.mxu0 }
  0xe7   :  { %v408_v55 = vadd.f32 %v3371_v51, %v4188_v52 }
  0xe8   :  { %v3373_v54 = vpop.f32.mrf.mxu0 }
  0xe9   :  { %v3374_v56 = vadd.f32 %v3373_v54, %v3372_v53  ;;  %v534_v60 = vmax.f32 %v408_v55, 0.0 }
  0xea   :  { %v3375_v57 = vpop.f32.mrf.mxu0 }
  0xeb   :  { %v411_v58 = vadd.f32 %v3374_v56, %v4188_v52 }
  0xec   :  { %v3376_v59 = vpop.f32.mrf.mxu0 }
  0xed   :  { %v535_v61 = vmax.f32 %v411_v58, 0.0  ;;  %v3377_v62 = vadd.f32 %v3376_v59, %v3375_v57 }
  0xee   :  { %v3378_v63 = vpop.f32.mrf.mxu0 }
  0xef   :  { %v4192_v0 = vpack.c.bf16 %v535_v61, %v534_v60  ;;  %v416_v2 = vadd.f32 %v3377_v62, %v4188_v52 }
  0xf0   :  { %v3379_v1 = vpop.f32.mrf.mxu0 }
  0xf1   :  { %v3380_v3 = vadd.f32 %v3379_v1, %v3378_v63  ;;  %v536_v7 = vmax.f32 %v416_v2, 0.0 }
  0xf2   :  { %v3381_v4 = vpop.f32.mrf.mxu0 }
  0xf3   :  { %v419_v5 = vadd.f32 %v3380_v3, %v4188_v52 }
  0xf4   :  { %v3382_v6 = vpop.f32.mrf.mxu0 }
  0xf5   :  { %v537_v8 = vmax.f32 %v419_v5, 0.0  ;;  %v4196_v9 = vadd.f32 %v3382_v6, %v3381_v4 }
  0xf6   :  { %v4198_v10 = vpop.f32.mrf.mxu0 }
  0xf7   :  { %v4200_v11 = vpack.c.bf16 %v537_v8, %v536_v7 }
  0xf8   :  { %v4202_v12 = vpop.f32.mrf.mxu0 }
  0xfa   :  { %v3387_v13 = vpop.f32.mrf.mxu0 }
  0xfc   :  { %v3388_v14 = vpop.f32.mrf.mxu0 }
  0xfd   :  { %v3389_v5 = vadd.f32 %v3388_v14, %v3387_v13 }
  0xfe   :  { %v3390_v15 = vpop.f32.mrf.mxu0 }
  0xff   :  { %v432_v14 = vadd.f32 %v3389_v5, %v4188_v52 }
 0x100   :  { %v3391_v16 = vpop.f32.mrf.mxu0 }
 0x101   :  { %v3392_v62 = vadd.f32 %v3391_v16, %v3390_v15  ;;  %v3386_v15 = vadd.f32 %v4202_v12, %v4198_v10 }
 0x102   :  { %v3393_v18 = vpop.f32.mrf.mxu0 }
 0x103   :  { %v427_v10 = vadd.f32 %v3386_v15, %v4188_v52 }
 0x104   :  { %v3394_v19 = vpop.f32.mrf.mxu0 }
 0x105   :  { %v3395_v56 = vadd.f32 %v3394_v19, %v3393_v18 }
 0x106   :  { %v3396_v20 = vpop.f32.mrf.mxu0 }
 0x107   :  { %v440_v6 = vadd.f32 %v3395_v56, %v4188_v52  ;;  %v566_v56 = vlaneseq }
 0x108   :  { %v3397_v21 = vpop.f32.mrf.mxu0 }
 0x109   :  { %v3398_v51 = vadd.f32 %v3397_v21, %v3396_v20  ;;  %v435_v20 = vadd.f32 %v3392_v62, %v4188_v52 }
 0x10a   :  { %v3399_v22 = vpop.f32.mrf.mxu0 }
 0x10b   :  { %v443_v1 = vadd.f32 %v3398_v51, %v4188_v52  ;;  %v541_v12 = vmax.f32 %v435_v20, 0.0 }
 0x10c   :  { %v3400_v23 = vpop.f32.mrf.mxu0 }
 0x10d   :  { %v3401_v43 = vadd.f32 %v3400_v23, %v3399_v22  ;;  %v543_v21 = vmax.f32 %v443_v1, 0.0 }
 0x10e   :  { %v3402_v24 = vpop.f32.mrf.mxu0 }
 0x10f   :  { %v448_v58 = vadd.f32 %v3401_v43, %v4188_v52 }
 0x110   :  { %v3403_v25 = vpop.f32.mrf.mxu0 }
 0x111   :  { %v3404_v40 = vadd.f32 %v3403_v25, %v3402_v24  ;;  %v544_v8 = vmax.f32 %v448_v58, 0.0  ;;  %v542_v24 = vmax.f32 %v440_v6, 0.0 }
 0x112   :  { %v3405_v26 = vpop.f32.mrf.mxu0 }
 0x113   :  { %v451_v53 = vadd.f32 %v3404_v40, %v4188_v52 }
 0x114   :  { %v3406_v27 = vpop.f32.mrf.mxu0 }
 0x115   :  { %v3407_v36 = vadd.f32 %v3406_v27, %v3405_v26  ;;  %v545_v2 = vmax.f32 %v451_v53, 0.0 }
 0x116   :  { %v3408_v28 = vpop.f32.mrf.mxu0 }
 0x117   :  { %v456_v45 = vadd.f32 %v3407_v36, %v4188_v52  ;;  %v732_v22 = vpack.c.bf16 %v545_v2, %v544_v8  ;;  %v539_v36 = vmax.f32 %v427_v10, 0.0 }
 0x118   :  { %v3409_v29 = vpop.f32.mrf.mxu0 }
 0x119   :  { %v3410_v34 = vadd.f32 %v3409_v29, %v3408_v28  ;;  %v546_v59 = vmax.f32 %v456_v45, 0.0  ;;  %v731_v29 = vpack.c.bf16 %v543_v21, %v542_v24 }
 0x11a   :  { %v3411_v30 = vpop.f32.mrf.mxu0 }
 0x11b   :  { %v459_v41 = vadd.f32 %v3410_v34, %v4188_v52 }
 0x11c   :  { %v3412_v31 = vpop.f32.mrf.mxu0 }
 0x11d   :  { %v3413_v32 = vadd.f32 %v3412_v31, %v3411_v30  ;;  %v547_v54 = vmax.f32 %v459_v41, 0.0  ;;  %v424_v31 = vadd.f32 %v4196_v9, %v4188_v52 }
 0x11e   :  { %v3414_v33 = vpop.f32.mrf.mxu0 }
 0x11f   :  { %v464_v37 = vadd.f32 %v3413_v32, %v4188_v52  ;;  %v733_v4 = vpack.c.bf16 %v547_v54, %v546_v59  ;;  %v540_v32 = vmax.f32 %v432_v14, 0.0  ;;  %v538_v40 = vmax.f32 %v424_v31, 0.0 }
 0x120   :  { %v3415_v35 = vpop.f32.mrf.mxu0 }
 0x121   :  { %v3416_v38 = vadd.f32 %v3415_v35, %v3414_v33  ;;  %v548_v46 = vmax.f32 %v464_v37, 0.0  ;;  %v730_v37 = vpack.c.bf16 %v541_v12, %v540_v32  ;;  %v729_v9 = vpack.c.bf16 %v539_v36, %v538_v40 }
 0x122   :  { %v3417_v39 = vpop.f32.mrf.mxu0 }
 0x123   :  { %v467_v42 = vadd.f32 %v3416_v38, %v4188_v52 }
 0x124   :  { %v3418_v44 = vpop.f32.mrf.mxu0 }
 0x125   :  { %v549_v47 = vmax.f32 %v467_v42, 0.0  ;;  %v3419_v49 = vadd.f32 %v3418_v44, %v3417_v39 }
 0x126   :  { %v3420_v50 = vpop.f32.mrf.mxu0 }
 0x127   :  { %v734_v55 = vpack.c.bf16 %v549_v47, %v548_v46  ;;  %v472_v60 = vadd.f32 %v3419_v49, %v4188_v52 }
 0x128   :  { %v3421_v57 = vpop.f32.mrf.mxu0 }
 0x129   :  { %v3422_v61 = vadd.f32 %v3421_v57, %v3420_v50  ;;  %1064 = vmatpush1.bf16.msra.mxu1 %v734_v55  ;;  %v550_v17 = vmax.f32 %v472_v60, 0.0 }
 0x12a   :  { %v3423_v63 = vpop.f32.mrf.mxu0  ;;  %1065 = vmatprep.subr.bf16.mxu1 %v3961_v48 }
 0x12b   :  { %v475_v3 = vadd.f32 %v3422_v61, %v4188_v52 }
 0x12c   :  { %v3424_v7 = vpop.f32.mrf.mxu0 }
 0x12d   :  { %v551_v18 = vmax.f32 %v475_v3, 0.0  ;;  %v3425_v19 = vadd.f32 %v3424_v7, %v3423_v63  ;;  %1066 = vmatpush1.bf16.msra.mxu1 %v733_v4 }
 0x12e   :  { %v3426_v16 = vpop.f32.mrf.mxu0  ;;  %1067 = vmatprep.subr.bf16.mxu1 %v3961_v48 }
 0x12f   :  { %v4222_v23 = vpack.c.bf16 %v551_v18, %v550_v17  ;;  %v480_v25 = vadd.f32 %v3425_v19, %v4188_v52 }
 0x130   :  { %v3427_v13 = vpop.f32.mrf.mxu0 }
 0x131   :  { %v3428_v26 = vadd.f32 %v3427_v13, %v3426_v16  ;;  %1068 = vmatpush1.bf16.msra.mxu1 %v732_v22  ;;  %v552_v33 = vmax.f32 %v480_v25, 0.0  ;;  %v3963_v16 = vmov 0.0  }
 0x132   :  { %v4226_v27 = vpop.f32.mrf.mxu0  ;;  %1069 = vmatprep.subr.bf16.mxu1 %v3961_v48 }
 0x133   :  { %v483_v28 = vadd.f32 %v3428_v26, %v4188_v52 }
 0x134   :  { %v4231_v30 = vpop.f32.mrf.mxu0 }
 0x135   :  { %v553_v34 = vmax.f32 %v483_v28, 0.0  ;;  %1070 = vmatpush1.bf16.msra.mxu1 %v731_v29 }
 0x136   :  { %v4235_v35 = vpop.f32.mrf.mxu0  ;;  %1071 = vmatprep.subr.bf16.mxu1 %v3961_v48 }
 0x137   :  { %v4238_v38 = vpack.c.bf16 %v553_v34, %v552_v33  ;;  %v3431_v34 = vadd.f32 %v4231_v30, %v4226_v27  ;;  %v3711_v30 = vld [vmem:[%s5026_s3 + $0x14] ss:$8 sps:$4 sm:$0xff]  }
 0x138   :  { %v4240_v39 = vpop.f32.mrf.mxu0 }
 0x139   :  { %1072 = vmatpush1.bf16.msra.mxu1 %v730_v37  ;;  %v3434_v29 = vadd.f32 %v4240_v39, %v4235_v35 }
 0x13a   :  { %v3435_v41 = vpop.f32.mrf.mxu0  ;;  %1073 = vmatprep.subr.bf16.mxu1 %v3961_v48 }
 0x13b   :  { %v491_v40 = vadd.f32 %v3434_v29, %v4188_v52  ;;  %v3777_v29 = vld [vmem:[%s5026_s3 + $0x174] ss:$8 sps:$4 sm:$0xff]  }
 0x13c   :  { %v3436_v42 = vpop.f32.mrf.mxu0 }
 0x13d   :  { %1074 = vmatpush1.bf16.msra.mxu1 %v729_v9  ;;  %v3437_v10 = vadd.f32 %v3436_v42, %v3435_v41  ;;  %v488_v42 = vadd.f32 %v3431_v34, %v4188_v52  ;;  %v555_v39 = vmax.f32 %v491_v40, 0.0  ;;  %v712_v34 = vld [vmem:[%s5026_s3 + $0x188] sm:$0xff] }
 0x13e   :  { %v3438_v43 = vpop.f32.mrf.mxu0  ;;  %1075 = vmatprep.subr.bf16.mxu1 %v3961_v48 }
 0x13f   :  { %v496_v36 = vadd.f32 %v3437_v10, %v4188_v52  ;;  %v3773_v10 = vld [vmem:[%s5026_s3 + $0x150] ss:$8 sps:$4 sm:$0xff]  }
 0x140   :  { %v3439_v44 = vpop.f32.mrf.mxu0 }
 0x141   :  { %1076 = vmatpush1.bf16.msra.mxu1 %v4200_v11  ;;  %v4249_v11 = vshrl.u32 %v566_v56, 7  ;;  %v3440_v14 = vadd.f32 %v3439_v44, %v3438_v43  ;;  %v556_v35 = vmax.f32 %v496_v36, 0.0  ;;  %v554_v44 = vmax.f32 %v488_v42, 0.0 }
 0x142   :  { %v3441_v45 = vpop.f32.mrf.mxu0  ;;  %1077 = vmatprep.subr.bf16.mxu1 %v3961_v48 }
 0x143   :  { %v597_v61 = vadd.s32 240, %v4249_v11  ;;  %v499_v31 = vadd.f32 %v3440_v14, %v4188_v52  ;;  %v737_v27 = vpack.c.bf16 %v555_v39, %v554_v44  ;;  %v3767_v14 = vld [vmem:[%s5026_s3 + $0x130] ss:$8 sps:$4 sm:$0xff]  }
 0x144   :  { %v3442_v46 = vpop.f32.mrf.mxu0 }
 0x145   :  { %1078 = vmatpush1.bf16.msra.mxu1 %v4192_v0  ;;  %vm629_vm0 = vcmp.lt.s32.totalorder %v597_v61, 242  ;;  %v3443_v21 = vadd.f32 %v3442_v46, %v3441_v45  ;;  %v557_v41 = vmax.f32 %v499_v31, 0.0  ;;  %v3713_v45 = vld [vmem:[%s5026_s3 + $0x10] ss:$8 sps:$4 sm:$0xff]  }
 0x146   :  { %v3444_v47 = vpop.f32.mrf.mxu0  ;;  %1079 = vmatprep.subr.bf16.mxu1 %v3961_v48  ;;  %vm3215_vm2 = vmpackc.low %vm3962_vm1, %vm629_vm0  ;;  %v3719_v46 = vld [vmem:[%s5026_s3 + $0x30] ss:$8 sps:$4 sm:$0xff]   ;;  %vm3075_vm0 = vcmask 1041408  }
 0x147   :  { %v504_v12 = vadd.f32 %v3443_v21, %v4188_v52  ;;  %v738_v43 = vpack.c.bf16 %v557_v41, %v556_v35  ;;  %v3737_v61 = vld [vmem:[%s5026_s3 + $0x90] ss:$8 sps:$4 sm:$0xff]   ;;  %v3762_v21 = vld [vmem:[%s5026_s3 + $0x124] ss:$8 sps:$4 sm:$0xff]  }
 0x148   :  { %v3445_v49 = vpop.f32.mrf.mxu0  ;;  %v3779_v31 = vld [vmem:[%s5026_s3 + $0x170] ss:$8 sps:$4 sm:$0xff]  }
 0x149   :  { %v3446_v18 = vadd.f32 %v3445_v49, %v3444_v47  ;;  %v558_v37 = vmax.f32 %v504_v12, 0.0  ;;  %v3720_v47 = vld [vmem:[%s5026_s3 + $0x44] ss:$8 sps:$4 sm:$0xff]   ;;  %v3722_v49 = vld [vmem:[%s5026_s3 + $0x40] ss:$8 sps:$4 sm:$0xff]   ;;  %v713_v41 = vld [vmem:[%s5026_s3 + $0x190] sm:$0xff] }
 0x14a   :  { %v3447_v50 = vpop.f32.mrf.mxu0  ;;  %v3774_v12 = vld [vmem:[%s5026_s3 + $0x164] ss:$8 sps:$4 sm:$0xff]  }
 0x14b   :  { %v507_v24 = vadd.f32 %v3446_v18, %v4188_v52  ;;  %v3756_v18 = vld [vmem:[%s5026_s3 + $0x104] ss:$8 sps:$4 sm:$0xff]  }
 0x14c   :  { %v3448_v51 = vpop.f32.mrf.mxu0 }
 0x14d   :  { %v3449_v7 = vadd.f32 %v3448_v51, %v3447_v50  ;;  %v559_v32 = vmax.f32 %v507_v24, 0.0  ;;  %v3723_v50 = vld [vmem:[%s5026_s3 + $0x54] ss:$8 sps:$4 sm:$0xff]   ;;  %v3725_v51 = vld [vmem:[%s5026_s3 + $0x50] ss:$8 sps:$4 sm:$0xff]  }
 0x14e   :  { %v3450_v53 = vpop.f32.mrf.mxu0  ;;  %v3768_v24 = vld [vmem:[%s5026_s3 + $0x144] ss:$8 sps:$4 sm:$0xff]  }
 0x14f   :  { %v512_v22 = vadd.f32 %v3449_v7, %v4188_v52  ;;  %v739_v9 = vpack.c.bf16 %v559_v32, %v558_v37  ;;  %v3752_v7 = vld [vmem:[%s5026_s3 + $0xe0] ss:$8 sps:$4 sm:$0xff]   ;;  %v3780_v32 = vld [vmem:[%s5026_s3 + $0x184] ss:$8 sps:$4 sm:$0xff]   ;;  %v3782_v37 = vld [vmem:[%s5026_s3 + $0x194] ss:$8 sps:$4 sm:$0xff]  }
 0x150   :  { %v3451_v54 = vpop.f32.mrf.mxu0 }
 0x151   :  { %v3452_v3 = vadd.f32 %v3451_v54, %v3450_v53  ;;  %v560_v28 = vmax.f32 %v512_v22, 0.0  ;;  %v3726_v53 = vld [vmem:[%s5026_s3 + $0x64] ss:$8 sps:$4 sm:$0xff]   ;;  %v3728_v54 = vld [vmem:[%s5026_s3 + $0x60] ss:$8 sps:$4 sm:$0xff]  }
 0x152   :  { %v3453_v55 = vpop.f32.mrf.mxu0  ;;  %v3764_v22 = vld [vmem:[%s5026_s3 + $0x120] ss:$8 sps:$4 sm:$0xff]  }
 0x153   :  { %v515_v19 = vadd.f32 %v3452_v3, %v4188_v52  ;;  %v3746_v3 = vld [vmem:[%s5026_s3 + $0xc0] ss:$8 sps:$4 sm:$0xff]  }
 0x154   :  { %v3454_v57 = vpop.f32.mrf.mxu0 }
 0x155   :  { %v3455_v63 = vadd.f32 %v3454_v57, %v3453_v55  ;;  %v561_v25 = vmax.f32 %v515_v19, 0.0  ;;  %v3729_v55 = vld [vmem:[%s5026_s3 + $0x74] ss:$8 sps:$4 sm:$0xff]   ;;  %v3731_v57 = vld [vmem:[%s5026_s3 + $0x70] ss:$8 sps:$4 sm:$0xff]  }
 0x156   :  { %v3456_v58 = vpop.f32.mrf.mxu0  ;;  %v3758_v19 = vld [vmem:[%s5026_s3 + $0x100] ss:$8 sps:$4 sm:$0xff]  }
 0x157   :  { %v520_v8 = vadd.f32 %v3455_v63, %v4188_v52  ;;  %v740_v33 = vpack.c.bf16 %v561_v25, %v560_v28  ;;  %v3741_v63 = vld [vmem:[%s5026_s3 + $0xb4] ss:$8 sps:$4 sm:$0xff]   ;;  %v3770_v25 = vld [vmem:[%s5026_s3 + $0x140] ss:$8 sps:$4 sm:$0xff]  }
 0x158   :  { %v3457_v59 = vpop.f32.mrf.mxu0  ;;  %v3776_v28 = vld [vmem:[%s5026_s3 + $0x160] ss:$8 sps:$4 sm:$0xff]  }
 0x159   :  { %v3458_v0 = vadd.f32 %v3457_v59, %v3456_v58  ;;  %v562_v13 = vmax.f32 %v520_v8, 0.0  ;;  %v3732_v58 = vld [vmem:[%s5026_s3 + $0x84] ss:$8 sps:$4 sm:$0xff]   ;;  %v3734_v59 = vld [vmem:[%s5026_s3 + $0x80] ss:$8 sps:$4 sm:$0xff]  }
 0x15a   :  { %v3459_v60 = vpop.f32.mrf.mxu0  ;;  %v3753_v8 = vld [vmem:[%s5026_s3 + $0xf4] ss:$8 sps:$4 sm:$0xff]  }
 0x15b   :  { %v523_v4 = vadd.f32 %v3458_v0, %v4188_v52  ;;  %v3738_v0 = vld [vmem:[%s5026_s3 + $0xa4] ss:$8 sps:$4 sm:$0xff]  }
 0x15c   :  { %v3460_v62 = vpop.f32.mrf.mxu0 }
 0x15d   :  { %v3461_v1 = vadd.f32 %v3460_v62, %v3459_v60  ;;  %v563_v15 = vmax.f32 %v523_v4, 0.0  ;;  %v3735_v60 = vld [vmem:[%s5026_s3 + $0x94] ss:$8 sps:$4 sm:$0xff]   ;;  %v3740_v62 = vld [vmem:[%s5026_s3 + $0xa0] ss:$8 sps:$4 sm:$0xff]  }
 0x15e   :  { %v3462_v2 = vpop.f32.mrf.mxu0  ;;  %v3747_v4 = vld [vmem:[%s5026_s3 + $0xd4] ss:$8 sps:$4 sm:$0xff]  }
 0x15f   :  { %v528_v5 = vadd.f32 %v3461_v1, %v4188_v52  ;;  %v741_v26 = vpack.c.bf16 %v563_v15, %v562_v13  ;;  %v3708_v52 = vld [vmem:[%s5026_s3] ss:$8 sps:$4 sm:$0xff]   ;;  %v3743_v1 = vld [vmem:[%s5026_s3 + $0xb0] ss:$8 sps:$4 sm:$0xff]   ;;  %v3744_v2 = vld [vmem:[%s5026_s3 + $0xc4] ss:$8 sps:$4 sm:$0xff]  }
 0x160   :  { %v3463_v6 = vpop.f32.mrf.mxu0  ;;  %v3759_v15 = vld [vmem:[%s5026_s3 + $0x114] ss:$8 sps:$4 sm:$0xff]  }
 0x161   :  { %v564_v17 = vmax.f32 %v528_v5, 0.0  ;;  %v3749_v5 = vld [vmem:[%s5026_s3 + $0xd0] ss:$8 sps:$4 sm:$0xff]   ;;  %v3750_v6 = vld [vmem:[%s5026_s3 + $0xe4] ss:$8 sps:$4 sm:$0xff]  }
 0x162   :  { %v3765_v13 = vld [vmem:[%s5026_s3 + $0x134] ss:$8 sps:$4 sm:$0xff]  }
 0x163   :  { %v3216_v20 = vpack.c.bf16 %v3963_v16, %v564_v17  ;;  %v3755_v17 = vld [vmem:[%s5026_s3 + $0xf0] ss:$8 sps:$4 sm:$0xff]  }
 0x165   :  { %3217 = vmatpush2.bf16.msk.msra.mxu1 %vm3215_vm2, %v3216_v20  ;;  %v3761_v20 = vld [vmem:[%s5026_s3 + $0x110] ss:$8 sps:$4 sm:$0xff]  }
 0x166   :  { %1081 = vmatprep.subr.bf16.mxu1 %v3961_v48 }
 0x169   :  { %1082 = vmatpush2.bf16.msra.mxu1 %v741_v26  ;;  %v3771_v26 = vld [vmem:[%s5026_s3 + $0x154] ss:$8 sps:$4 sm:$0xff]  }
 0x16a   :  { %1083 = vmatprep.subr.bf16.mxu1 %v3961_v48 }
 0x16d   :  { %1084 = vmatpush2.bf16.msra.mxu1 %v740_v33  ;;  %v711_v33 = vld [vmem:[%s5026_s3 + $0x180] sm:$0xff] }
 0x16e   :  { %1085 = vmatprep.subr.bf16.mxu1 %v3961_v48  ;;  %v3199_v36 = vcombine.low %v711_v33, %v712_v34  ;;  %v3803_v34 = vld [vmem:[%s5027_s4 + $0x38] sm:$0xff]  }
 0x171   :  { %1086 = vmatpush2.bf16.msra.mxu1 %v739_v9  ;;  %v714_v9 = vld [vmem:[%s5026_s3 + $0x198] sm:$0xff] }
 0x172   :  { %1087 = vmatprep.subr.bf16.mxu1 %v3961_v48  ;;  %v3201_v39 = vcombine.low %v713_v41, %v714_v9  ;;  %v3805_v41 = vld [vmem:[%s5027_s4 + $0x30] sm:$0xff]  }
 0x175   :  { %1088 = vmatpush2.bf16.msra.mxu1 %v738_v43  ;;  %v3784_v43 = vld [vmem:[%s5026_s3 + $0x1a4] ss:$8 sps:$4 sm:$0xff]  }
 0x176   :  { %1089 = vmatprep.subr.bf16.mxu1 %v3961_v48 }
 0x179   :  { %1090 = vmatpush2.bf16.msra.mxu1 %v737_v27 }
 0x17a   :  { %1091 = vmatprep.subr.bf16.mxu1 %v3961_v48 }
 0x17d   :  { %1092 = vmatpush2.bf16.msra.mxu1 %v4238_v38  ;;  %v3717_v38 = vld [vmem:[%s5026_s3 + $0x34] ss:$8 sps:$4 sm:$0xff]  }
 0x17e   :  { %1093 = vmatprep.subr.bf16.mxu1 %v3961_v48  ;;  %v3714_v48 = vld [vmem:[%s5026_s3 + $0x24] ss:$8 sps:$4 sm:$0xff]  }
 0x181   :  { %1094 = vmatpush2.bf16.msra.mxu1 %v4222_v23  ;;  %v3716_v23 = vld [vmem:[%s5026_s3 + $0x20] ss:$8 sps:$4 sm:$0xff]  }
 0x184   :  { %1096 = vmatmul.mubr.bf16.vlgmr.msra.gmra.mxu1 %v3708_v52 }
 0x185   :  { %1103 = vmatprep.mubr.bf16.mxu1 %v3711_v30 }
 0x18c   :  { %1104 = vmatmul.mubr.bf16.gmra.mxu1 %v3713_v45  ;;  %v3786_v45 = vld [vmem:[%s5026_s3 + $0x1a0] ss:$8 sps:$4 sm:$0xff]  }
 0x18d   :  { %1111 = vmatprep.mubr.bf16.mxu1 %v3714_v48  ;;  %v3787_v48 = vld [vmem:[%s5026_s3 + $0x1b4] ss:$8 sps:$4 sm:$0xff]  }
 0x194   :  { %1112 = vmatmul.mubr.bf16.gmra.mxu1 %v3716_v23 }
 0x195   :  { %1119 = vmatprep.mubr.bf16.mxu1 %v3717_v38 }
 0x19c   :  { %1120 = vmatmul.mubr.bf16.gmra.mxu1 %v3719_v46 }
 0x19d   :  { %1127 = vmatprep.mubr.bf16.mxu1 %v3720_v47 }
 0x1a4   :  { %1128 = vmatmul.mubr.bf16.gmra.mxu1 %v3722_v49  ;;  %v3789_v49 = vld [vmem:[%s5026_s3 + $0x1b0] ss:$8 sps:$4 sm:$0xff]  }
 0x1a5   :  { %1135 = vmatprep.mubr.bf16.mxu1 %v3723_v50  ;;  %v3792_v50 = vld [vmem:[%s5026_s3 + $0x1c4] ss:$8 sps:$4 sm:$0xff]  }
 0x1ac   :  { %1136 = vmatmul.mubr.bf16.gmra.mxu1 %v3725_v51 }
 0x1ad   :  { %1143 = vmatprep.mubr.bf16.mxu1 %v3726_v53 }
 0x1b4   :  { %1144 = vmatmul.mubr.bf16.gmra.mxu1 %v3728_v54 }
 0x1b5   :  { %1151 = vmatprep.mubr.bf16.mxu1 %v3729_v55 }
 0x1bc   :  { %1152 = vmatmul.mubr.bf16.gmra.mxu1 %v3731_v57  ;;  %v3790_v57 = vld [vmem:[%s5026_s3 + $0x1c0] ss:$8 sps:$4 sm:$0xff]  }
 0x1bd   :  { %1159 = vmatprep.mubr.bf16.mxu1 %v3732_v58  ;;  %v3795_v58 = vld [vmem:[%s5026_s3 + $0x1d4] ss:$8 sps:$4 sm:$0xff]  }
 0x1c4   :  { %1160 = vmatmul.mubr.bf16.gmra.mxu1 %v3734_v59 }
 0x1c5   :  { %1167 = vmatprep.mubr.bf16.mxu1 %v3735_v60 }
 0x1cc   :  { %1168 = vmatmul.mubr.bf16.gmra.mxu1 %v3737_v61 }
 0x1cd   :  { %1175 = vmatprep.mubr.bf16.mxu1 %v3738_v0 }
 0x1d4   :  { %1176 = vmatmul.mubr.bf16.gmra.mxu1 %v3740_v62  ;;  %v3793_v62 = vld [vmem:[%s5026_s3 + $0x1d0] ss:$8 sps:$4 sm:$0xff]  }
 0x1d5   :  { %1183 = vmatprep.mubr.bf16.mxu1 %v3741_v63  ;;  %v3798_v63 = vld [vmem:[%s5026_s3 + $0x1e4] ss:$8 sps:$4 sm:$0xff]  }
 0x1dc   :  { %1184 = vmatmul.mubr.bf16.gmra.mxu1 %v3743_v1 }
 0x1dd   :  { %1191 = vmatprep.mubr.bf16.mxu1 %v3744_v2 }
 0x1e4   :  { %1192 = vmatmul.mubr.bf16.gmra.mxu1 %v3746_v3 }
 0x1e5   :  { %1199 = vmatprep.mubr.bf16.mxu1 %v3747_v4 }
 0x1ec   :  { %1200 = vmatmul.mubr.bf16.gmra.mxu1 %v3749_v5  ;;  %v3796_v5 = vld [vmem:[%s5026_s3 + $0x1e0] ss:$8 sps:$4 sm:$0xff]  }
 0x1ed   :  { %1207 = vmatprep.mubr.bf16.mxu1 %v3750_v6  ;;  %v3801_v6 = vld [vmem:[%s5026_s3 + $0x1f4] ss:$8 sps:$4 sm:$0xff]  }
 0x1f4   :  { %1208 = vmatmul.mubr.bf16.gmra.mxu1 %v3752_v7 }
 0x1f5   :  { %1215 = vmatprep.mubr.bf16.mxu1 %v3753_v8 }
 0x1fc   :  { %1216 = vmatmul.mubr.bf16.gmra.mxu1 %v3755_v17 }
 0x1fd   :  { %1223 = vmatprep.mubr.bf16.mxu1 %v3756_v18 }
 0x204   :  { %1224 = vmatmul.mubr.bf16.gmra.mxu1 %v3758_v19  ;;  %v3799_v19 = vld [vmem:[%s5026_s3 + $0x1f0] ss:$8 sps:$4 sm:$0xff]   ;;  %s3969_s3 = smov [#allocation5]  }
 0x205   :  { %1231 = vmatprep.mubr.bf16.mxu1 %v3759_v15 }
 0x20c   :  { %1232 = vmatmul.mubr.bf16.gmra.mxu1 %v3761_v20 }
 0x20d   :  { %1239 = vmatprep.mubr.bf16.mxu1 %v3762_v21 }
 0x214   :  { %1240 = vmatmul.mubr.bf16.gmra.mxu1 %v3764_v22 }
 0x215   :  { %1247 = vmatprep.mubr.bf16.mxu1 %v3765_v13 }
 0x21c   :  { %1248 = vmatmul.mubr.bf16.gmra.mxu1 %v3767_v14 }
 0x21d   :  { %1255 = vmatprep.mubr.bf16.mxu1 %v3768_v24 }
 0x224   :  { %1256 = vmatmul.mubr.bf16.gmra.mxu1 %v3770_v25 }
 0x225   :  { %1263 = vmatprep.mubr.bf16.mxu1 %v3771_v26 }
 0x22c   :  { %1264 = vmatmul.mubr.bf16.gmra.mxu1 %v3773_v10 }
 0x22d   :  { %1271 = vmatprep.mubr.bf16.mxu1 %v3774_v12 }
 0x234   :  { %1272 = vmatmul.mubr.bf16.gmra.mxu1 %v3776_v28 }
 0x235   :  { %1279 = vmatprep.mubr.bf16.mxu1 %v3777_v29 }
 0x23c   :  { %1280 = vmatmul.mubr.bf16.gmra.mxu1 %v3779_v31 }
 0x23d   :  { %1287 = vmatprep.mubr.bf16.mxu1 %v3780_v32  ;;  %v3802_v32 = vld [vmem:[%s5027_s4 + $0x78] sm:$0xff]  }
 0x23e   :  { %3465 = vmatprep.subr.bf16.mxu0 %v3802_v32 }
 0x23f   :  { %3466 = vmatpush3.bf16.msra.mxu0 %v3803_v34 }
 0x244   :  { %v1097_v40 = vpop.f32.mrf.mxu1  ;;  %1288 = vmatmul.mubr.bf16.gmra.mxu1 %v3199_v36 }
 0x245   :  { %1353 = vst.msk [vmem:[#allocation2] sm:$0xff] %vm1352_vm3, %v1097_v40  ;;  %1295 = vmatprep.mubr.bf16.mxu1 %v3782_v37  ;;  %v3804_v37 = vld [vmem:[%s5027_s4 + $0x70] sm:$0xff]  }
 0x246   :  { %v1099_v42 = vpop.f32.mrf.mxu1  ;;  %3467 = vmatprep.subr.bf16.mxu0 %v3804_v37 }
 0x247   :  { %3468 = vmatpush3.bf16.msra.mxu0 %v3805_v41  ;;  %v3806_v42 = vld [vmem:[%s5027_s4 + $0x68] sm:$0xff]  }
 0x248   :  { %v1100_v35 = vpop.f32.mrf.mxu1  ;;  %3469 = vmatprep.subr.bf16.mxu0 %v3806_v42 }
 0x249   :  { %1354 = vst.msk [vmem:[#allocation2 + $0x20] sm:$0xff] %vm1352_vm3, %v1100_v35 }
 0x24a   :  { %v1102_v44 = vpop.f32.mrf.mxu1 }
 0x24b   :  { %v3808_v44 = vld [vmem:[%s5027_s4 + $0x60] sm:$0xff]  }
 0x24c   :  { %v1105_v27 = vpop.f32.mrf.mxu1  ;;  %1296 = vmatmul.mubr.bf16.gmra.mxu1 %v3201_v39  ;;  %v3807_v39 = vld [vmem:[%s5027_s4 + $0x28] sm:$0xff]  }
 0x24d   :  { %1355 = vst.msk [vmem:[#allocation2 + $0x40] sm:$0xff] %vm1352_vm3, %v1105_v27  ;;  %1303 = vmatprep.mubr.bf16.mxu1 %v3784_v43  ;;  %3470 = vmatpush3.bf16.msra.mxu0 %v3807_v39 }
 0x24e   :  { %v1107_v52 = vpop.f32.mrf.mxu1  ;;  %3471 = vmatprep.subr.bf16.mxu0 %v3808_v44 }
 0x24f   :  { %v3809_v52 = vld [vmem:[%s5027_s4 + $0x20] sm:$0xff]  }
 0x250   :  { %v1108_v30 = vpop.f32.mrf.mxu1 }
 0x251   :  { %1356 = vst.msk [vmem:[#allocation2 + $0x60] sm:$0xff] %vm1352_vm3, %v1108_v30  ;;  %3472 = vmatpush3.bf16.msra.mxu0 %v3809_v52 }
 0x252   :  { %v1110_v23 = vpop.f32.mrf.mxu1 }
 0x253   :  { %v3811_v23 = vld [vmem:[%s5027_s4 + $0x18] sm:$0xff]  }
 0x254   :  { %v1113_v38 = vpop.f32.mrf.mxu1  ;;  %1304 = vmatmul.mubr.bf16.gmra.mxu1 %v3786_v45  ;;  %v3810_v45 = vld [vmem:[%s5027_s4 + $0x58] sm:$0xff]  }
 0x255   :  { %1361 = vrot.lane.b32.xlu1 %v1113_v38, %s3964_s29  ;;  %1311 = vmatprep.mubr.bf16.mxu1 %v3787_v48 }
 0x256   :  { %v1115_v46 = vpop.f32.mrf.mxu1  ;;  %3473 = vmatprep.subr.bf16.mxu0 %v3810_v45 }
 0x257   :  { %3474 = vmatpush3.bf16.msra.mxu0 %v3811_v23  ;;  %v3812_v46 = vld [vmem:[%s5027_s4 + $0x50] sm:$0xff]  }
 0x258   :  { %v1116_v47 = vpop.f32.mrf.mxu1  ;;  %3475 = vmatprep.subr.bf16.mxu0 %v3812_v46 }
 0x259   :  { %1363 = vrot.lane.b32.xlu1 %v1116_v47, %s3964_s29 }
 0x25a   :  { %v1118_v51 = vpop.f32.mrf.mxu1 }
 0x25b   :  { %v3814_v51 = vld [vmem:[%s5027_s4 + $0x48] sm:$0xff]  }
 0x25c   :  { %v1121_v53 = vpop.f32.mrf.mxu1  ;;  %1312 = vmatmul.mubr.bf16.gmra.mxu1 %v3789_v49  ;;  %v3813_v49 = vld [vmem:[%s5027_s4 + $0x10] sm:$0xff]  }
 0x25d   :  { %1365 = vrot.lane.b32.xlu0 %v1121_v53, %s3964_s29  ;;  %1319 = vmatprep.mubr.bf16.mxu1 %v3792_v50 }
 0x25e   :  { %v1123_v54 = vpop.f32.mrf.mxu1  ;;  %3476 = vmatpush3.bf16.msra.mxu0 %v3813_v49 }
 0x25f   :  { %v3815_v54 = vld [vmem:[%s5027_s4 + $0x8] sm:$0xff]   ;;  %3477 = vmatprep.subr.bf16.mxu0 %v3814_v51 }
 0x260   :  { %v1124_v55 = vpop.f32.mrf.mxu1 }
 0x261   :  { %1367 = vrot.lane.b32.xlu1 %v1124_v55, %s3964_s29 }
 0x262   :  { %v1126_v59 = vpop.f32.mrf.mxu1  ;;  %3478 = vmatpush3.bf16.msra.mxu0 %v3815_v54 }
 0x263   :  { %v3817_v59 = vld [vmem:[%s5027_s4] sm:$0xff]  }
 0x264   :  { %v1129_v60 = vpop.f32.mrf.mxu1  ;;  %1320 = vmatmul.mubr.bf16.gmra.mxu1 %v3790_v57  ;;  %v3816_v57 = vld [vmem:[%s5027_s4 + $0x40] sm:$0xff]  }
 0x265   :  { %1382 = vrot.lane.b32.xlu0 %v1129_v60, %s3965_s18  ;;  %1327 = vmatprep.mubr.bf16.mxu1 %v3795_v58 }
 0x266   :  { %v1131_v61 = vpop.f32.mrf.mxu1  ;;  %3479 = vmatprep.subr.bf16.mxu0 %v3816_v57 }
 0x267   :  { %3480 = vmatpush3.bf16.msra.mxu0 %v3817_v59 }
 0x268   :  { %v1132_v0 = vpop.f32.mrf.mxu1 }
 0x269   :  { %1384 = vrot.lane.b32.xlu1 %v1132_v0, %s3965_s18 }
 0x26a   :  { %v1134_v1 = vpop.f32.mrf.mxu1 }
 0x26c   :  { %v1137_v2 = vpop.f32.mrf.mxu1  ;;  %1328 = vmatmul.mubr.bf16.gmra.mxu1 %v3793_v62 }
 0x26d   :  { %1386 = vrot.lane.b32.xlu0 %v1137_v2, %s3965_s18  ;;  %1335 = vmatprep.mubr.bf16.mxu1 %v3798_v63 }
 0x26e   :  { %v1139_v3 = vpop.f32.mrf.mxu1 }
 0x270   :  { %v1140_v4 = vpop.f32.mrf.mxu1 }
 0x271   :  { %1388 = vrot.lane.b32.xlu1 %v1140_v4, %s3965_s18 }
 0x272   :  { %v1142_v7 = vpop.f32.mrf.mxu1 }
 0x274   :  { %v1145_v8 = vpop.f32.mrf.mxu1  ;;  %1336 = vmatmul.mubr.bf16.gmra.mxu1 %v3796_v5 }
 0x275   :  { %1403 = vrot.lane.b32.xlu0 %v1145_v8, %s3966_s27  ;;  %1343 = vmatprep.mubr.bf16.mxu1 %v3801_v6 }
 0x276   :  { %v1147_v17 = vpop.f32.mrf.mxu1 }
 0x278   :  { %v1148_v18 = vpop.f32.mrf.mxu1 }
 0x279   :  { %1405 = vrot.lane.b32.xlu1 %v1148_v18, %s3966_s27 }
 0x27a   :  { %v1150_v15 = vpop.f32.mrf.mxu1 }
 0x27c   :  { %v1153_v20 = vpop.f32.mrf.mxu1  ;;  %1344 = vmatmul.mubr.bf16.gmra.mxu1 %v3799_v19 }
 0x27d   :  { %1407 = vrot.lane.b32.xlu0 %v1153_v20, %s3966_s27 }
 0x27e   :  { %v1155_v21 = vpop.f32.mrf.mxu1 }
 0x280   :  { %v1156_v22 = vpop.f32.mrf.mxu1 }
 0x281   :  { %1409 = vrot.lane.b32.xlu1 %v1156_v22, %s3966_s27 }
 0x282   :  { %v1158_v13 = vpop.f32.mrf.mxu1 }
 0x284   :  { %v1161_v14 = vpop.f32.mrf.mxu1 }
 0x285   :  { %1420 = vst.msk [vmem:[#allocation2 + $0x8] sm:$0xff] %vm1352_vm3, %v1161_v14 }
 0x286   :  { %v1163_v24 = vpop.f32.mrf.mxu1 }
 0x288   :  { %v1164_v25 = vpop.f32.mrf.mxu1 }
 0x289   :  { %1421 = vst.msk [vmem:[#allocation2 + $0x28] sm:$0xff] %vm1352_vm3, %v1164_v25 }
 0x28a   :  { %v1166_v26 = vpop.f32.mrf.mxu1 }
 0x28c   :  { %v1169_v10 = vpop.f32.mrf.mxu1 }
 0x28d   :  { %1422 = vst.msk [vmem:[#allocation2 + $0x48] sm:$0xff] %vm1352_vm3, %v1169_v10 }
 0x28e   :  { %v1171_v12 = vpop.f32.mrf.mxu1 }
 0x290   :  { %v1172_v28 = vpop.f32.mrf.mxu1 }
 0x291   :  { %1423 = vst.msk [vmem:[#allocation2 + $0x68] sm:$0xff] %vm1352_vm3, %v1172_v28 }
 0x292   :  { %v1174_v29 = vpop.f32.mrf.mxu1 }
 0x294   :  { %v1177_v31 = vpop.f32.mrf.mxu1 }
 0x295   :  { %1428 = vrot.lane.b32.xlu0 %v1177_v31, %s3964_s29 }
 0x296   :  { %v1179_v33 = vpop.f32.mrf.mxu1 }
 0x298   :  { %v1180_v36 = vpop.f32.mrf.mxu1 }
 0x299   :  { %1430 = vrot.lane.b32.xlu0 %v1180_v36, %s3964_s29 }
 0x29a   :  { %v1182_v40 = vpop.f32.mrf.mxu1 }
 0x29c   :  { %v1185_v9 = vpop.f32.mrf.mxu1 }
 0x29d   :  { %1432 = vrot.lane.b32.xlu0 %v1185_v9, %s3964_s29 }
 0x29e   :  { %v1187_v35 = vpop.f32.mrf.mxu1 }
 0x2a0   :  { %v1188_v43 = vpop.f32.mrf.mxu1 }
 0x2a1   :  { %1434 = vrot.lane.b32.xlu1 %v1188_v43, %s3964_s29 }
 0x2a2   :  { %v1190_v27 = vpop.f32.mrf.mxu1 }
 0x2a4   :  { %v1193_v30 = vpop.f32.mrf.mxu1 }
 0x2a5   :  { %1448 = vrot.lane.b32.xlu0 %v1193_v30, %s3965_s18 }
 0x2a6   :  { %v1195_v48 = vpop.f32.mrf.mxu1 }
 0x2a8   :  { %v1196_v38 = vpop.f32.mrf.mxu1 }
 0x2a9   :  { %1450 = vrot.lane.b32.xlu1 %v1196_v38, %s3965_s18 }
 0x2aa   :  { %v1198_v47 = vpop.f32.mrf.mxu1 }
 0x2ac   :  { %v1201_v50 = vpop.f32.mrf.mxu1 }
 0x2ad   :  { %1452 = vrot.lane.b32.xlu0 %v1201_v50, %s3965_s18 }
 0x2ae   :  { %v1203_v53 = vpop.f32.mrf.mxu1 }
 0x2b0   :  { %v1204_v55 = vpop.f32.mrf.mxu1 }
 0x2b1   :  { %1454 = vrot.lane.b32.xlu1 %v1204_v55, %s3965_s18 }
 0x2b2   :  { %v1206_v58 = vpop.f32.mrf.mxu1 }
 0x2b4   :  { %v1209_v60 = vpop.f32.mrf.mxu1 }
 0x2b5   :  { %1468 = vrot.lane.b32.xlu0 %v1209_v60, %s3966_s27 }
 0x2b6   :  { %v1211_v61 = vpop.f32.mrf.mxu1 }
 0x2b8   :  { %v1212_v0 = vpop.f32.mrf.mxu1 }
 0x2b9   :  { %1470 = vrot.lane.b32.xlu1 %v1212_v0, %s3966_s27 }
 0x2ba   :  { %v1214_v62 = vpop.f32.mrf.mxu1 }
 0x2bc   :  { %v1217_v63 = vpop.f32.mrf.mxu1 }
 0x2bd   :  { %1472 = vrot.lane.b32.xlu0 %v1217_v63, %s3966_s27  ;;  %v3818_v63 = vld [vmem:[%s5027_s4 + $0xf8] sm:$0xff]  }
 0x2be   :  { %v1219_v1 = vpop.f32.mrf.mxu1  ;;  %3493 = vmatprep.subr.bf16.mxu0 %v3818_v63  ;;  %v3833_v63 = vld [vmem:[%s5027_s4 + $0x80] sm:$0xff]  }
 0x2c0   :  { %v1220_v2 = vpop.f32.mrf.mxu1 }
 0x2c1   :  { %1474 = vrot.lane.b32.xlu1 %v1220_v2, %s3966_s27 }
 0x2c2   :  { %v1222_v3 = vpop.f32.mrf.mxu1 }
 0x2c4   :  { %v1225_v4 = vpop.f32.mrf.mxu1 }
 0x2c5   :  { %1484 = vst.msk [vmem:[#allocation2 + $0x10] sm:$0xff] %vm1352_vm3, %v1225_v4 }
 0x2c6   :  { %v1227_v5 = vpop.f32.mrf.mxu1 }
 0x2c7   :  { %v1362_v6 = vpop.permute.xlu1 %1361 }
 0x2c8   :  { %1374 = vst.msk [vmem:[#allocation2] sm:$0xff] %vm1373_vm4, %v1362_v6  ;;  %v1228_v7 = vpop.f32.mrf.mxu1 }
 0x2c9   :  { %1485 = vst.msk [vmem:[#allocation2 + $0x30] sm:$0xff] %vm1352_vm3, %v1228_v7 }
 0x2ca   :  { %v1230_v8 = vpop.f32.mrf.mxu1 }
 0x2cb   :  { %v1364_v17 = vpop.permute.xlu1 %1363 }
 0x2cc   :  { %1375 = vst.msk [vmem:[#allocation2 + $0x20] sm:$0xff] %vm1373_vm4, %v1364_v17  ;;  %v1233_v18 = vpop.f32.mrf.mxu1 }
 0x2cd   :  { %1486 = vst.msk [vmem:[#allocation2 + $0x50] sm:$0xff] %vm1352_vm3, %v1233_v18 }
 0x2ce   :  { %v1235_v19 = vpop.f32.mrf.mxu1 }
 0x2cf   :  { %v1366_v15 = vpop.permute.xlu0 %1365 }
 0x2d0   :  { %1376 = vst.msk [vmem:[#allocation2 + $0x40] sm:$0xff] %vm1373_vm4, %v1366_v15  ;;  %v1236_v20 = vpop.f32.mrf.mxu1 }
 0x2d1   :  { %1487 = vst.msk [vmem:[#allocation2 + $0x70] sm:$0xff] %vm1352_vm3, %v1236_v20 }
 0x2d2   :  { %v1238_v21 = vpop.f32.mrf.mxu1 }
 0x2d3   :  { %v1368_v22 = vpop.permute.xlu1 %1367 }
 0x2d4   :  { %1377 = vst.msk [vmem:[#allocation2 + $0x60] sm:$0xff] %vm1373_vm4, %v1368_v22  ;;  %v1241_v13 = vpop.f32.mrf.mxu1 }
 0x2d5   :  { %1492 = vrot.lane.b32.xlu0 %v1241_v13, %s3964_s29 }
 0x2d6   :  { %v1243_v14 = vpop.f32.mrf.mxu1 }
 0x2d7   :  { %v1383_v24 = vpop.permute.xlu0 %1382 }
 0x2d8   :  { %1395 = vst.msk [vmem:[#allocation2] sm:$0xff] %vm1394_vm5, %v1383_v24  ;;  %v1244_v25 = vpop.f32.mrf.mxu1 }
 0x2d9   :  { %1494 = vrot.lane.b32.xlu1 %v1244_v25, %s3964_s29 }
 0x2da   :  { %v1246_v26 = vpop.f32.mrf.mxu1 }
 0x2db   :  { %v1385_v10 = vpop.permute.xlu1 %1384 }
 0x2dc   :  { %1396 = vst.msk [vmem:[#allocation2 + $0x20] sm:$0xff] %vm1394_vm5, %v1385_v10  ;;  %v1249_v12 = vpop.f32.mrf.mxu1 }
 0x2dd   :  { %1496 = vrot.lane.b32.xlu0 %v1249_v12, %s3964_s29 }
 0x2de   :  { %v1251_v28 = vpop.f32.mrf.mxu1 }
 0x2df   :  { %v1387_v29 = vpop.permute.xlu0 %1386 }
 0x2e0   :  { %1397 = vst.msk [vmem:[#allocation2 + $0x40] sm:$0xff] %vm1394_vm5, %v1387_v29  ;;  %v1252_v31 = vpop.f32.mrf.mxu1 }
 0x2e1   :  { %1498 = vrot.lane.b32.xlu1 %v1252_v31, %s3964_s29 }
 0x2e2   :  { %v1254_v32 = vpop.f32.mrf.mxu1 }
 0x2e3   :  { %v1389_v33 = vpop.permute.xlu1 %1388 }
 0x2e4   :  { %1398 = vst.msk [vmem:[#allocation2 + $0x60] sm:$0xff] %vm1394_vm5, %v1389_v33  ;;  %v1257_v34 = vpop.f32.mrf.mxu1 }
 0x2e5   :  { %1512 = vrot.lane.b32.xlu0 %v1257_v34, %s3965_s18 }
 0x2e6   :  { %v1259_v36 = vpop.f32.mrf.mxu1 }
 0x2e7   :  { %v1404_v37 = vpop.permute.xlu0 %1403 }
 0x2e8   :  { %1416 = vst.msk [vmem:[#allocation2] sm:$0xff] %vm1415_vm6, %v1404_v37  ;;  %v1260_v40 = vpop.f32.mrf.mxu1  ;;  %v3819_v37 = vld [vmem:[%s5027_s4 + $0xb8] sm:$0xff]  }
 0x2e9   :  { %1514 = vrot.lane.b32.xlu1 %v1260_v40, %s3965_s18 }
 0x2ea   :  { %v1262_v41 = vpop.f32.mrf.mxu1 }
 0x2eb   :  { %v1406_v9 = vpop.permute.xlu1 %1405 }
 0x2ec   :  { %1417 = vst.msk [vmem:[#allocation2 + $0x20] sm:$0xff] %vm1415_vm6, %v1406_v9  ;;  %v4572_v42 = vpop.f32.mrf.mxu1  ;;  %v3820_v9 = vld [vmem:[%s5027_s4 + $0xf0] sm:$0xff]  }
 0x2ee   :  { %v1267_v35 = vpop.f32.mrf.mxu1 }
 0x2ef   :  { %v1408_v39 = vpop.permute.xlu0 %1407  ;;  %v1612_v36 = vld [vmem:[#allocation2] sm:$0xff] }
 0x2f0   :  { %1418 = vst.msk [vmem:[#allocation2 + $0x40] sm:$0xff] %vm1415_vm6, %v1408_v39  ;;  %v4575_v43 = vpop.f32.mrf.mxu1  ;;  %v3821_v39 = vld [vmem:[%s5027_s4 + $0xb0] sm:$0xff]  }
 0x2f2   :  { %v1270_v44 = vpop.f32.mrf.mxu1 }
 0x2f3   :  { %v1410_v27 = vpop.permute.xlu1 %1409  ;;  %v1616_v28 = vld [vmem:[#allocation2 + $0x20] sm:$0xff] }
 0x2f4   :  { %1419 = vst.msk [vmem:[#allocation2 + $0x60] sm:$0xff] %vm1415_vm6, %v1410_v27  ;;  %v1273_v52 = vpop.f32.mrf.mxu1  ;;  %v1692_v40 = vpack.c.bf16 %v1616_v28, %v1612_v36 }
 0x2f5   :  { %1532 = vrot.lane.b32.xlu0 %v1273_v52, %s3966_s27  ;;  %v3822_v52 = vld [vmem:[%s5027_s4 + $0xe8] sm:$0xff]  }
 0x2f6   :  { %v1275_v30 = vpop.f32.mrf.mxu1 }
 0x2f8   :  { %v1276_v45 = vpop.f32.mrf.mxu1 }
 0x2f9   :  { %1534 = vrot.lane.b32.xlu1 %v1276_v45, %s3966_s27 }
 0x2fa   :  { %v1278_v48 = vpop.f32.mrf.mxu1 }
 0x2fb   :  { %v1624_v27 = vld [vmem:[#allocation2 + $0x60] sm:$0xff] }
 0x2fc   :  { %v4580_v23 = vpop.f32.mrf.mxu1 }
 0x2fe   :  { %v1283_v38 = vpop.f32.mrf.mxu1 }
 0x300   :  { %v4582_v46 = vpop.f32.mrf.mxu1 }
 0x302   :  { %v1286_v47 = vpop.f32.mrf.mxu1 }
 0x303   :  { %v1620_v47 = vld [vmem:[#allocation2 + $0x40] sm:$0xff] }
 0x304   :  { %v1289_v49 = vpop.f32.mrf.mxu1 }
 0x305   :  { %1548 = vst.msk [vmem:[#allocation2 + $0x18] sm:$0xff] %vm1352_vm3, %v1289_v49  ;;  %v3823_v49 = vld [vmem:[%s5027_s4 + $0xa8] sm:$0xff]  }
 0x306   :  { %v1291_v50 = vpop.f32.mrf.mxu1 }
 0x307   :  { %v1429_v51 = vpop.permute.xlu0 %1428 }
 0x308   :  { %1440 = vst.msk [vmem:[#allocation2 + $0x8] sm:$0xff] %vm1373_vm4, %v1429_v51  ;;  %v1292_v53 = vpop.f32.mrf.mxu1  ;;  %v3824_v51 = vld [vmem:[%s5027_s4 + $0xe0] sm:$0xff]  }
 0x309   :  { %1549 = vst.msk [vmem:[#allocation2 + $0x38] sm:$0xff] %vm1352_vm3, %v1292_v53 }
 0x30a   :  { %v1294_v54 = vpop.f32.mrf.mxu1 }
 0x30b   :  { %v1431_v55 = vpop.permute.xlu0 %1430  ;;  %v3825_v54 = vld [vmem:[%s5027_s4 + $0xa0] sm:$0xff]  }
 0x30c   :  { %1441 = vst.msk [vmem:[#allocation2 + $0x28] sm:$0xff] %vm1373_vm4, %v1431_v55  ;;  %v1297_v57 = vpop.f32.mrf.mxu1 }
 0x30d   :  { %1550 = vst.msk [vmem:[#allocation2 + $0x58] sm:$0xff] %vm1352_vm3, %v1297_v57  ;;  %v3827_v57 = vld [vmem:[%s5027_s4 + $0x98] sm:$0xff]  }
 0x30e   :  { %v1299_v58 = vpop.f32.mrf.mxu1 }
 0x30f   :  { %v1433_v59 = vpop.permute.xlu0 %1432 }
 0x310   :  { %1442 = vst.msk [vmem:[#allocation2 + $0x48] sm:$0xff] %vm1373_vm4, %v1433_v59  ;;  %v1300_v60 = vpop.f32.mrf.mxu1  ;;  %v3829_v59 = vld [vmem:[%s5027_s4 + $0x90] sm:$0xff]  }
 0x311   :  { %1551 = vst.msk [vmem:[#allocation2 + $0x78] sm:$0xff] %vm1352_vm3, %v1300_v60  ;;  %v3830_v60 = vld [vmem:[%s5027_s4 + $0xc8] sm:$0xff]  }
 0x312   :  { %v1302_v61 = vpop.f32.mrf.mxu1 }
 0x313   :  { %v1435_v0 = vpop.permute.xlu1 %1434 }
 0x314   :  { %1443 = vst.msk [vmem:[#allocation2 + $0x68] sm:$0xff] %vm1373_vm4, %v1435_v0  ;;  %v1305_v62 = vpop.f32.mrf.mxu1  ;;  %v3832_v0 = vld [vmem:[%s5027_s4 + $0xc0] sm:$0xff]  }
 0x315   :  { %1556 = vrot.lane.b32.xlu0 %v1305_v62, %s3964_s29 }
 0x316   :  { %v1307_v1 = vpop.f32.mrf.mxu1 }
 0x317   :  { %v1449_v2 = vpop.permute.xlu0 %1448 }
 0x318   :  { %1460 = vst.msk [vmem:[#allocation2 + $0x8] sm:$0xff] %vm1394_vm5, %v1449_v2  ;;  %v1308_v3 = vpop.f32.mrf.mxu1 }
 0x319   :  { %1558 = vrot.lane.b32.xlu1 %v1308_v3, %s3964_s29 }
 0x31a   :  { %v1310_v4 = vpop.f32.mrf.mxu1 }
 0x31b   :  { %v1451_v5 = vpop.permute.xlu1 %1450 }
 0x31c   :  { %1461 = vst.msk [vmem:[#allocation2 + $0x28] sm:$0xff] %vm1394_vm5, %v1451_v5  ;;  %v1313_v6 = vpop.f32.mrf.mxu1 }
 0x31d   :  { %1560 = vrot.lane.b32.xlu0 %v1313_v6, %s3964_s29 }
 0x31e   :  { %v1315_v7 = vpop.f32.mrf.mxu1 }
 0x31f   :  { %v1453_v8 = vpop.permute.xlu0 %1452 }
 0x320   :  { %1462 = vst.msk [vmem:[#allocation2 + $0x48] sm:$0xff] %vm1394_vm5, %v1453_v8  ;;  %v1316_v17 = vpop.f32.mrf.mxu1 }
 0x321   :  { %1562 = vrot.lane.b32.xlu1 %v1316_v17, %s3964_s29 }
 0x322   :  { %v1318_v18 = vpop.f32.mrf.mxu1 }
 0x323   :  { %v1455_v19 = vpop.permute.xlu1 %1454 }
 0x324   :  { %1463 = vst.msk [vmem:[#allocation2 + $0x68] sm:$0xff] %vm1394_vm5, %v1455_v19  ;;  %v1321_v15 = vpop.f32.mrf.mxu1 }
 0x325   :  { %1576 = vrot.lane.b32.xlu0 %v1321_v15, %s3965_s18 }
 0x326   :  { %v1323_v20 = vpop.f32.mrf.mxu1 }
 0x327   :  { %v1469_v21 = vpop.permute.xlu0 %1468 }
 0x328   :  { %1480 = vst.msk [vmem:[#allocation2 + $0x8] sm:$0xff] %vm1415_vm6, %v1469_v21  ;;  %v1324_v22 = vpop.f32.mrf.mxu1 }
 0x329   :  { %1578 = vrot.lane.b32.xlu1 %v1324_v22, %s3965_s18 }
 0x32a   :  { %v1326_v13 = vpop.f32.mrf.mxu1 }
 0x32b   :  { %v1471_v14 = vpop.permute.xlu1 %1470 }
 0x32c   :  { %1481 = vst.msk [vmem:[#allocation2 + $0x28] sm:$0xff] %vm1415_vm6, %v1471_v14  ;;  %v1329_v24 = vpop.f32.mrf.mxu1 }
 0x32d   :  { %1580 = vrot.lane.b32.xlu0 %v1329_v24, %s3965_s18 }
 0x32e   :  { %v1331_v25 = vpop.f32.mrf.mxu1 }
 0x32f   :  { %v1473_v26 = vpop.permute.xlu0 %1472  ;;  %v1613_v31 = vld [vmem:[#allocation2 + $0x8] sm:$0xff] }
 0x330   :  { %1482 = vst.msk [vmem:[#allocation2 + $0x48] sm:$0xff] %vm1415_vm6, %v1473_v26  ;;  %v1332_v10 = vpop.f32.mrf.mxu1 }
 0x331   :  { %1582 = vrot.lane.b32.xlu1 %v1332_v10, %s3965_s18 }
 0x332   :  { %v1334_v12 = vpop.f32.mrf.mxu1 }
 0x333   :  { %v1475_v29 = vpop.permute.xlu1 %1474  ;;  %v1617_v32 = vld [vmem:[#allocation2 + $0x28] sm:$0xff] }
 0x334   :  { %1483 = vst.msk [vmem:[#allocation2 + $0x68] sm:$0xff] %vm1415_vm6, %v1475_v29  ;;  %v1337_v33 = vpop.f32.mrf.mxu1  ;;  %v1693_v34 = vpack.c.bf16 %v1617_v32, %v1613_v31 }
 0x335   :  { %1596 = vrot.lane.b32.xlu0 %v1337_v33, %s3966_s27 }
 0x336   :  { %v1339_v41 = vpop.f32.mrf.mxu1  ;;  %1931 = vmatprep.mubr.bf16.mxu0 %v1693_v34 }
 0x337   :  { %1932 = vmatmul.mubr.bf16.vlgmr.msra.gmra.mxu0 %v1692_v40  ;;  %v1621_v30 = vld [vmem:[#allocation2 + $0x48] sm:$0xff] }
 0x338   :  { %v1340_v35 = vpop.f32.mrf.mxu1  ;;  %3494 = vmatpush3.bf16.msra.mxu0 %v3819_v37 }
 0x339   :  { %1516 = vrot.lane.b32.xlu0 %v4572_v42, %s3965_s18  ;;  %1598 = vrot.lane.b32.xlu1 %v1340_v35, %s3966_s27  ;;  %v1696_v42 = vpack.c.bf16 %v1624_v27, %v1620_v47 }
 0x33a   :  { %v1342_v44 = vpop.f32.mrf.mxu1  ;;  %3495 = vmatprep.subr.bf16.mxu0 %v3820_v9 }
 0x33b   :  { %v1625_v45 = vld [vmem:[#allocation2 + $0x68] sm:$0xff] }
 0x33c   :  { %v1345_v48 = vpop.f32.mrf.mxu1  ;;  %v1697_v38 = vpack.c.bf16 %v1625_v45, %v1621_v30  ;;  %3496 = vmatpush3.bf16.msra.mxu0 %v3821_v39 }
 0x33d   :  { %1518 = vrot.lane.b32.xlu1 %v4575_v43, %s3965_s18  ;;  %1600 = vrot.lane.b32.xlu0 %v1345_v48, %s3966_s27  ;;  %v3826_v43 = vld [vmem:[%s5027_s4 + $0xd8] sm:$0xff]  }
 0x33e   :  { %v1347_v50 = vpop.f32.mrf.mxu1  ;;  %1939 = vmatprep.mubr.bf16.mxu0 %v1697_v38  ;;  %3497 = vmatprep.subr.bf16.mxu0 %v3822_v52 }
 0x33f   :  { %1940 = vmatmul.mubr.bf16.gmra.mxu0 %v1696_v42 }
 0x340   :  { %v1348_v53 = vpop.f32.mrf.mxu1  ;;  %3498 = vmatpush3.bf16.msra.mxu0 %v3823_v49 }
 0x341   :  { %1536 = vrot.lane.b32.xlu0 %v4580_v23, %s3966_s27  ;;  %1602 = vrot.lane.b32.xlu1 %v1348_v53, %s3966_s27  ;;  %v3828_v23 = vld [vmem:[%s5027_s4 + $0xd0] sm:$0xff]  }
 0x342   :  { %v1350_v55 = vpop.f32.mrf.mxu1  ;;  %3499 = vmatprep.subr.bf16.mxu0 %v3824_v51 }
 0x344   :  { %3500 = vmatpush3.bf16.msra.mxu0 %v3825_v54 }
 0x345   :  { %1538 = vrot.lane.b32.xlu1 %v4582_v46, %s3966_s27  ;;  %3501 = vmatprep.subr.bf16.mxu0 %v3826_v43  ;;  %v3831_v46 = vld [vmem:[%s5027_s4 + $0x88] sm:$0xff]  }
 0x347   :  { %v1493_v58 = vpop.permute.xlu0 %1492 }
 0x348   :  { %1504 = vst.msk [vmem:[#allocation2 + $0x10] sm:$0xff] %vm1373_vm4, %v1493_v58  ;;  %3502 = vmatpush3.bf16.msra.mxu0 %v3827_v57  ;;  %v3218_v57 = vld [vmem:[%s5028_s5] ss:$0 sm:$0xff] }
 0x349   :  { %3503 = vmatprep.subr.bf16.mxu0 %v3828_v23 }
 0x34b   :  { %v1495_v61 = vpop.permute.xlu1 %1494 }
 0x34c   :  { %1505 = vst.msk [vmem:[#allocation2 + $0x30] sm:$0xff] %vm1373_vm4, %v1495_v61  ;;  %3504 = vmatpush3.bf16.msra.mxu0 %v3829_v59 }
 0x34d   :  { %3505 = vmatprep.subr.bf16.mxu0 %v3830_v60 }
 0x34f   :  { %v1497_v62 = vpop.permute.xlu0 %1496 }
 0x350   :  { %1506 = vst.msk [vmem:[#allocation2 + $0x50] sm:$0xff] %vm1373_vm4, %v1497_v62  ;;  %3506 = vmatpush3.bf16.msra.mxu0 %v3831_v46 }
 0x351   :  { %3507 = vmatprep.subr.bf16.mxu0 %v3832_v0 }
 0x353   :  { %v1499_v1 = vpop.permute.xlu1 %1498 }
 0x354   :  { %1507 = vst.msk [vmem:[#allocation2 + $0x70] sm:$0xff] %vm1373_vm4, %v1499_v1  ;;  %3508 = vmatpush3.bf16.msra.mxu0 %v3833_v63 }
 0x355   :  { %3599 = vmatprep.subr.bf16.mxu0 %v3963_v16 }
 0x357   :  { %v1513_v2 = vpop.permute.xlu0 %1512 }
 0x358   :  { %1524 = vst.msk [vmem:[#allocation2 + $0x10] sm:$0xff] %vm1394_vm5, %v1513_v2 }
 0x35b   :  { %v1515_v3 = vpop.permute.xlu1 %1514 }
 0x35c   :  { %1525 = vst.msk [vmem:[#allocation2 + $0x30] sm:$0xff] %vm1394_vm5, %v1515_v3 }
 0x367   :  { %v1533_v4 = vpop.permute.xlu0 %1532 }
 0x368   :  { %1544 = vst.msk [vmem:[#allocation2 + $0x10] sm:$0xff] %vm1415_vm6, %v1533_v4 }
 0x36b   :  { %v1535_v5 = vpop.permute.xlu1 %1534 }
 0x36c   :  { %1545 = vst.msk [vmem:[#allocation2 + $0x30] sm:$0xff] %vm1415_vm6, %v1535_v5 }
 0x36f   :  { %v1614_v31 = vld [vmem:[#allocation2 + $0x10] sm:$0xff] }
 0x373   :  { %v1618_v25 = vld [vmem:[#allocation2 + $0x30] sm:$0xff] }
 0x374   :  { %v1694_v32 = vpack.c.bf16 %v1618_v25, %v1614_v31  ;;  %v3841_v25 = vld [vmem:[%s5030_s7 + $0x70] sm:$0xff]   ;;  %v3847_v31 = vld [vmem:[%s5030_s7 + $0x58] sm:$0xff]  }
 0x387   :  { %v1557_v6 = vpop.permute.xlu0 %1556 }
 0x388   :  { %1568 = vst.msk [vmem:[#allocation2 + $0x18] sm:$0xff] %vm1373_vm4, %v1557_v6 }
 0x38b   :  { %v1559_v7 = vpop.permute.xlu1 %1558 }
 0x38c   :  { %1569 = vst.msk [vmem:[#allocation2 + $0x38] sm:$0xff] %vm1373_vm4, %v1559_v7 }
 0x38f   :  { %v1561_v8 = vpop.permute.xlu0 %1560 }
 0x390   :  { %1570 = vst.msk [vmem:[#allocation2 + $0x58] sm:$0xff] %vm1373_vm4, %v1561_v8 }
 0x393   :  { %v1563_v17 = vpop.permute.xlu1 %1562 }
 0x394   :  { %1571 = vst.msk [vmem:[#allocation2 + $0x78] sm:$0xff] %vm1373_vm4, %v1563_v17 }
 0x397   :  { %v1577_v18 = vpop.permute.xlu0 %1576 }
 0x398   :  { %1588 = vst.msk [vmem:[#allocation2 + $0x18] sm:$0xff] %vm1394_vm5, %v1577_v18 }
 0x39b   :  { %v1579_v19 = vpop.permute.xlu1 %1578 }
 0x39c   :  { %1589 = vst.msk [vmem:[#allocation2 + $0x38] sm:$0xff] %vm1394_vm5, %v1579_v19 }
 0x39f   :  { %v1581_v15 = vpop.permute.xlu0 %1580 }
 0x3a0   :  { %1590 = vst.msk [vmem:[#allocation2 + $0x58] sm:$0xff] %vm1394_vm5, %v1581_v15  ;;  %v3834_v15 = vld [vmem:[%s5029_s6] sm:$0xff]  }
 0x3a3   :  { %v1583_v20 = vpop.permute.xlu1 %1582 }
 0x3a4   :  { %1591 = vst.msk [vmem:[#allocation2 + $0x78] sm:$0xff] %vm1394_vm5, %v1583_v20  ;;  %v3835_v20 = vld [vmem:[%s5029_s6 + $0x8] sm:$0xff]  }
 0x3a7   :  { %v1597_v21 = vpop.permute.xlu0 %1596 }
 0x3a8   :  { %1608 = vst.msk [vmem:[#allocation2 + $0x18] sm:$0xff] %vm1415_vm6, %v1597_v21  ;;  %v3836_v21 = vld [vmem:[%s5029_s6 + $0x10] sm:$0xff]  }
 0x3ab   :  { %v1517_v22 = vpop.permute.xlu0 %1516  ;;  %v1599_v13 = vpop.permute.xlu1 %1598 }
 0x3ac   :  { %1526 = vst.msk [vmem:[#allocation2 + $0x50] sm:$0xff] %vm1394_vm5, %v1517_v22  ;;  %v3837_v22 = vld [vmem:[%s5029_s6 + $0x18] sm:$0xff]  }
 0x3ad   :  { %1609 = vst.msk [vmem:[#allocation2 + $0x38] sm:$0xff] %vm1415_vm6, %v1599_v13  ;;  %v3838_v13 = vld [vmem:[%s5029_s6 + $0x20] ss:$0 sps:$4 sm:$0xff]  }
 0x3af   :  { %v1519_v14 = vpop.permute.xlu1 %1518  ;;  %v1601_v24 = vpop.permute.xlu0 %1600  ;;  %v1615_v12 = vld [vmem:[#allocation2 + $0x18] sm:$0xff] }
 0x3b0   :  { %1527 = vst.msk [vmem:[#allocation2 + $0x70] sm:$0xff] %vm1394_vm5, %v1519_v14  ;;  %v3839_v14 = vld [vmem:[%s5030_s7 + $0x78] sm:$0xff]  }
 0x3b1   :  { %1610 = vst.msk [vmem:[#allocation2 + $0x58] sm:$0xff] %vm1415_vm6, %v1601_v24  ;;  %v3840_v24 = vld [vmem:[%s5030_s7 + $0x38] sm:$0xff]  }
 0x3b3   :  { %v1537_v26 = vpop.permute.xlu0 %1536  ;;  %v1603_v10 = vpop.permute.xlu1 %1602 }
 0x3b4   :  { %v1619_v28 = vld [vmem:[#allocation2 + $0x38] sm:$0xff]  ;;  %1546 = vst.msk [vmem:[#allocation2 + $0x50] sm:$0xff] %vm1415_vm6, %v1537_v26  ;;  %1611 = vst.msk [vmem:[#allocation2 + $0x78] sm:$0xff] %vm1415_vm6, %v1603_v10  ;;  %v3842_v26 = vld [vmem:[%s5030_s7 + $0x30] sm:$0xff]  }
 0x3b5   :  { %v1695_v29 = vpack.c.bf16 %v1619_v28, %v1615_v12  ;;  %v3843_v10 = vld [vmem:[%s5030_s7 + $0x68] sm:$0xff]   ;;  %v3845_v28 = vld [vmem:[%s5030_s7 + $0x60] sm:$0xff]  }
 0x3b6   :  { %v3844_v12 = vld [vmem:[%s5030_s7 + $0x28] sm:$0xff]  }
 0x3b7   :  { %1980 = vmatprep.mubr.bf16.mxu0 %v1695_v29  ;;  %v1539_v33 = vpop.permute.xlu1 %1538  ;;  %v3846_v29 = vld [vmem:[%s5030_s7 + $0x20] sm:$0xff]  }
 0x3b8   :  { %1981 = vmatmul.mubr.bf16.vlgmr.msra.gmra.mxu0 %v1694_v32  ;;  %1547 = vst.msk [vmem:[#allocation2 + $0x70] sm:$0xff] %vm1415_vm6, %v1539_v33  ;;  %v1623_v34 = vld [vmem:[#allocation2 + $0x58] sm:$0xff]  ;;  %v3849_v33 = vld [vmem:[%s5030_s7 + $0x50] sm:$0xff]  }
 0x3b9   :  { %v3848_v32 = vld [vmem:[%s5030_s7 + $0x18] sm:$0xff]  }
 0x3bb   :  { %v1627_v36 = vld [vmem:[#allocation2 + $0x78] sm:$0xff]  ;;  %v1622_v40 = vld [vmem:[#allocation2 + $0x50] sm:$0xff] }
 0x3bc   :  { %v1699_v37 = vpack.c.bf16 %v1627_v36, %v1623_v34  ;;  %v3850_v34 = vld [vmem:[%s5030_s7 + $0x10] sm:$0xff]  }
 0x3be   :  { %1988 = vmatprep.mubr.bf16.mxu0 %v1699_v37  ;;  %v3851_v37 = vld [vmem:[%s5030_s7 + $0x48] sm:$0xff]  }
 0x3bf   :  { %v1626_v41 = vld [vmem:[#allocation2 + $0x70] sm:$0xff] }
 0x3c0   :  { %v1698_v9 = vpack.c.bf16 %v1626_v41, %v1622_v40  ;;  %v3852_v40 = vld [vmem:[%s5030_s7 + $0x8] sm:$0xff]   ;;  %v3853_v41 = vld [vmem:[%s5030_s7 + $0x40] sm:$0xff]  }
 0x3c2   :  { %1989 = vmatmul.mubr.bf16.gmra.mxu0 %v1698_v9 }
 0x3c3   :  { %3603 = vmatprep.mubr.msk.bf16.mxu0 %vm3967_vm7, %v3963_v16 }
 0x3f7   :  { %v3481_v35 = vpop.f32.mrf.mxu0 }
 0x3f9   :  { %v3482_v39 = vpop.f32.mrf.mxu0 }
 0x3fa   :  { %v3483_v58 = vadd.f32 %v3482_v39, %v3481_v35  ;;  %v3854_v35 = vld [vmem:[%s5030_s7] sm:$0xff]  }
 0x3fb   :  { %v3484_v44 = vpop.f32.mrf.mxu0 }
 0x3fc   :  { %v1934_v2 = vadd.f32 %v3483_v58, %v3218_v57  ;;  %v3875_v58 = vld [vmem:[%s5032_s9 + $0x70] ss:$8 sps:$4 sm:$0xff]  }
 0x3fd   :  { %v3485_v27 = vpop.f32.mrf.mxu0 }
 0x3fe   :  { %v3486_v53 = vadd.f32 %v3485_v27, %v3484_v44 }
 0x3ff   :  { %v3487_v52 = vpop.f32.mrf.mxu0 }
 0x400   :  { %v1937_v61 = vadd.f32 %v3486_v53, %v3218_v57 }
 0x401   :  { %v3488_v30 = vpop.f32.mrf.mxu0 }
 0x402   :  { %v3489_v51 = vadd.f32 %v3488_v30, %v3487_v52  ;;  %v3855_v52 = vld [vmem:[%s5030_s7 + $0xf8] sm:$0xff]  }
 0x403   :  { %v3490_v45 = vpop.f32.mrf.mxu0 }
 0x404   :  { %v1942_v59 = vadd.f32 %v3489_v51, %v3218_v57 }
 0x405   :  { %v3491_v48 = vpop.f32.mrf.mxu0 }
 0x406   :  { %v3492_v43 = vadd.f32 %v3491_v48, %v3490_v45 }
 0x408   :  { %v1945_v0 = vadd.f32 %v3492_v43, %v3218_v57 }
 0x478   :  { %v3509_v38 = vpop.f32.mrf.mxu0 }
 0x47a   :  { %v3510_v47 = vpop.f32.mrf.mxu0 }
 0x47b   :  { %v3511_v62 = vadd.f32 %v3510_v47, %v3509_v38 }
 0x47c   :  { %v3512_v49 = vpop.f32.mrf.mxu0 }
 0x47d   :  { %v1983_v5 = vadd.f32 %v3511_v62, %v1934_v2  ;;  %v3886_v62 = vld [vmem:[%s5032_s9 + $0x44] ss:$8 sps:$4 sm:$0xff]  }
 0x47e   :  { %v3513_v42 = vpop.f32.mrf.mxu0 }
 0x47f   :  { %v3514_v60 = vadd.f32 %v3513_v42, %v3512_v49  ;;  %v1997_v18 = vmax.f32 %v1983_v5, 0.0 }
 0x481   :  { %v1986_v3 = vadd.f32 %v3514_v60, %v1937_v61  ;;  %v3880_v60 = vld [vmem:[%s5032_s9 + $0x64] ss:$8 sps:$4 sm:$0xff]   ;;  %v3878_v61 = vld [vmem:[%s5032_s9 + $0x60] ss:$8 sps:$4 sm:$0xff]  }
 0x482   :  { %v3515_v50 = vpop.f32.mrf.mxu0 }
 0x483   :  { %v1998_v8 = vmax.f32 %v1986_v3, 0.0 }
 0x484   :  { %v3516_v54 = vpop.f32.mrf.mxu0 }
 0x485   :  { %v3517_v55 = vadd.f32 %v3516_v54, %v3515_v50  ;;  %v2010_v19 = vpack.c.bf16 %v1998_v8, %v1997_v18  ;;  %v3858_v18 = vld [vmem:[%s5030_s7 + $0xb0] sm:$0xff]  }
 0x486   :  { %v3518_v23 = vpop.f32.mrf.mxu0 }
 0x487   :  { %v1991_v63 = vadd.f32 %v3517_v55, %v1942_v59  ;;  %v3877_v59 = vld [vmem:[%s5032_s9 + $0x74] ss:$8 sps:$4 sm:$0xff]  }
 0x488   :  { %v3519_v46 = vpop.f32.mrf.mxu0  ;;  %2847 = vmatprep.subr.bf16.mxu1 %v3877_v59 }
 0x489   :  { %v3520_v1 = vadd.f32 %v3519_v46, %v3518_v23  ;;  %v1999_v6 = vmax.f32 %v1991_v63, 0.0  ;;  %2848 = vmatpush1.bf16.msra.mxu1 %v3875_v58  ;;  %v3883_v46 = vld [vmem:[%s5032_s9 + $0x54] ss:$8 sps:$4 sm:$0xff]   ;;  %v3884_v63 = vld [vmem:[%s5032_s9 + $0x40] ss:$8 sps:$4 sm:$0xff]  }
 0x48a   :  { %2849 = vmatprep.subr.bf16.mxu1 %v3880_v60  ;;  %v3917_v58 = vld [vmem:[%s5032_s9 + $0x90] ss:$8 sps:$4 sm:$0xff]  }
 0x48b   :  { %v1994_v4 = vadd.f32 %v3520_v1, %v1945_v0  ;;  %v3881_v0 = vld [vmem:[%s5032_s9 + $0x50] ss:$8 sps:$4 sm:$0xff]  }
 0x48d   :  { %v2000_v7 = vmax.f32 %v1994_v4, 0.0  ;;  %2850 = vmatpush1.bf16.msra.mxu1 %v3878_v61 }
 0x48e   :  { %2851 = vmatprep.subr.bf16.mxu1 %v3883_v46 }
 0x48f   :  { %v2011_v17 = vpack.c.bf16 %v2000_v7, %v1999_v6  ;;  %v3856_v7 = vld [vmem:[%s5030_s7 + $0xb8] sm:$0xff]  }
 0x491   :  { %3600 = vmatpush3.bf16.msra.mxu0 %v2011_v17  ;;  %2852 = vmatpush1.bf16.msra.mxu1 %v3881_v0  ;;  %v3857_v17 = vld [vmem:[%s5030_s7 + $0xf0] sm:$0xff]  }
 0x492   :  { %3601 = vmatprep.subr.bf16.mxu0 %v3963_v16  ;;  %2853 = vmatprep.subr.bf16.mxu1 %v3886_v62 }
 0x495   :  { %3602 = vmatpush3.bf16.msra.mxu0 %v2010_v19  ;;  %2854 = vmatpush1.bf16.msra.mxu1 %v3884_v63  ;;  %v3859_v19 = vld [vmem:[%s5030_s7 + $0xe8] sm:$0xff]  }
 0x496   :  { %3528 = vmatprep.subr.bf16.mxu0 %v3839_v14 }
 0x498   :  { %3604 = vmatmul.mubr.msk.bf16.vlgmr.msra.gmra.mxu0 %vm1352_vm3, %v3834_v15 }
 0x499   :  { %3607 = vmatprep.mubr.msk.bf16.mxu0 %vm3967_vm7, %v3963_v16  ;;  %3529 = vmatpush3.bf16.msra.mxu0 %v3840_v24  ;;  %v3864_v24 = vld [vmem:[%s5030_s7 + $0x98] sm:$0xff]  }
 0x49a   :  { %3530 = vmatprep.subr.bf16.mxu0 %v3841_v25 }
 0x49d   :  { %3531 = vmatpush3.bf16.msra.mxu0 %v3842_v26  ;;  %v3865_v26 = vld [vmem:[%s5030_s7 + $0xd0] sm:$0xff]  }
 0x49e   :  { %3532 = vmatprep.subr.bf16.mxu0 %v3843_v10  ;;  %v3866_v10 = vld [vmem:[%s5030_s7 + $0x90] sm:$0xff]  }
 0x4a0   :  { %3608 = vmatmul.mubr.msk.bf16.gmra.mxu0 %vm1352_vm3, %v3835_v20  ;;  %v3860_v20 = vld [vmem:[%s5030_s7 + $0xa8] sm:$0xff]  }
 0x4a1   :  { %3611 = vmatprep.mubr.msk.bf16.mxu0 %vm3967_vm7, %v3963_v16  ;;  %3533 = vmatpush3.bf16.msra.mxu0 %v3844_v12  ;;  %v3867_v12 = vld [vmem:[%s5030_s7 + $0xc8] sm:$0xff]  }
 0x4a2   :  { %3534 = vmatprep.subr.bf16.mxu0 %v3845_v28  ;;  %v3868_v28 = vld [vmem:[%s5030_s7 + $0x88] sm:$0xff]  }
 0x4a5   :  { %3535 = vmatpush3.bf16.msra.mxu0 %v3846_v29  ;;  %v3869_v29 = vld [vmem:[%s5030_s7 + $0xc0] sm:$0xff]  }
 0x4a6   :  { %3536 = vmatprep.subr.bf16.mxu0 %v3847_v31  ;;  %v3870_v31 = vld [vmem:[%s5030_s7 + $0x80] sm:$0xff]  }
 0x4a8   :  { %3612 = vmatmul.mubr.msk.bf16.gmra.mxu0 %vm1352_vm3, %v3836_v21  ;;  %v3861_v21 = vld [vmem:[%s5030_s7 + $0xe0] sm:$0xff]  }
 0x4a9   :  { %3615 = vmatprep.mubr.msk.bf16.mxu0 %vm3967_vm7, %v3963_v16  ;;  %3537 = vmatpush3.bf16.msra.mxu0 %v3848_v32 }
 0x4aa   :  { %3538 = vmatprep.subr.bf16.mxu0 %v3849_v33  ;;  %v3871_v33 = vld [vmem:[%s5030_s7 + $0x118] sm:$0xff]  }
 0x4ad   :  { %3539 = vmatpush3.bf16.msra.mxu0 %v3850_v34 }
 0x4ae   :  { %3540 = vmatprep.subr.bf16.mxu0 %v3851_v37  ;;  %v3873_v37 = vld [vmem:[%s5030_s7 + $0x108] sm:$0xff]  }
 0x4b0   :  { %3616 = vmatmul.mubr.msk.bf16.gmra.mxu0 %vm1352_vm3, %v3837_v22  ;;  %v3862_v22 = vld [vmem:[%s5030_s7 + $0xa0] sm:$0xff]  }
 0x4b1   :  { %3619 = vmatprep.mubr.msk.bf16.mxu0 %vm3967_vm7, %v3963_v16  ;;  %3541 = vmatpush3.bf16.msra.mxu0 %v3852_v40  ;;  %v3874_v40 = vld [vmem:[%s5030_s7 + $0x100] sm:$0xff]  }
 0x4b2   :  { %3542 = vmatprep.subr.bf16.mxu0 %v3853_v41 }
 0x4b5   :  { %3543 = vmatpush3.bf16.msra.mxu0 %v3854_v35  ;;  %v3887_v35 = vld [vmem:[%s5032_s9 + $0x30] ss:$8 sps:$4 sm:$0xff]  }
 0x4b6   :  { %3550 = vmatprep.subr.bf16.mxu0 %v3855_v52  ;;  %v3895_v52 = vld [vmem:[%s5032_s9 + $0x14] ss:$8 sps:$4 sm:$0xff]  }
 0x4b8   :  { %3620 = vmatmul.mubr.msk.bf16.gmra.mxu0 %vm1352_vm3, %v3838_v13  ;;  %v3863_v13 = vld [vmem:[%s5030_s7 + $0xd8] sm:$0xff]  }
 0x558   :  { %v2084_v36 = vpop.f32.mrf.mxu0 }
 0x559   :  { %2123 = vst.msk [vmem:[#allocation3] sm:$0xff] %vm2122_vm8, %v2084_v36  ;;  %v3872_v36 = vld [vmem:[%s5030_s7 + $0x110] sm:$0xff]  }
 0x55a   :  { %v3605_v9 = vpop.f32.mrf.mxu0 }
 0x55c   :  { %v2087_v39 = vpop.f32.mrf.mxu0 }
 0x55d   :  { %2125 = vrot.lane.b32.xlu1 %v2087_v39, %s3965_s18  ;;  %v3889_v39 = vld [vmem:[%s5032_s9 + $0x34] ss:$8 sps:$4 sm:$0xff]  }
 0x55e   :  { %v3606_v44 = vpop.f32.mrf.mxu0  ;;  %2855 = vmatprep.subr.bf16.mxu1 %v3889_v39  ;;  %v3930_v39 = vld [vmem:[%s5034_s11 + $0x20] sm:$0xff]  }
 0x55f   :  { %v3892_v44 = vld [vmem:[%s5032_s9 + $0x24] ss:$8 sps:$4 sm:$0xff]   ;;  %2856 = vmatpush1.bf16.msra.mxu1 %v3887_v35 }
 0x560   :  { %v2092_v27 = vpop.f32.mrf.mxu0  ;;  %2857 = vmatprep.subr.bf16.mxu1 %v3892_v44  ;;  %v3929_v35 = vld [vmem:[%s5034_s11 + $0x60] sm:$0xff]   ;;  %v3931_v44 = vld [vmem:[%s5034_s11 + $0x58] sm:$0xff]  }
 0x561   :  { %2130 = vst.msk [vmem:[#allocation3 + $0x8] sm:$0xff] %vm2122_vm8, %v2092_v27  ;;  %v3893_v27 = vld [vmem:[%s5032_s9 + $0x10] ss:$8 sps:$4 sm:$0xff]  }
 0x562   :  { %v3609_v30 = vpop.f32.mrf.mxu0 }
 0x563   :  { %v3896_v30 = vld [vmem:[%s5032_s9] ss:$8 sps:$4 sm:$0xff]  }
 0x564   :  { %v2095_v45 = vpop.f32.mrf.mxu0 }
 0x565   :  { %2132 = vrot.lane.b32.xlu0 %v2095_v45, %s3965_s18  ;;  %v3898_v45 = vld [vmem:[%s5032_s9 + $0x4] ss:$8 sps:$4 sm:$0xff]  }
 0x566   :  { %v3610_v48 = vpop.f32.mrf.mxu0 }
 0x567   :  { %v3899_v48 = vld [vmem:[%s5032_s9 + $0xf0] ss:$8 sps:$4 sm:$0xff]  }
 0x568   :  { %v2100_v38 = vpop.f32.mrf.mxu0 }
 0x569   :  { %2136 = vst.msk [vmem:[#allocation3 + $0x10] sm:$0xff] %vm2122_vm8, %v2100_v38  ;;  %v3901_v38 = vld [vmem:[%s5032_s9 + $0xf4] ss:$8 sps:$4 sm:$0xff]  }
 0x56a   :  { %v3613_v47 = vpop.f32.mrf.mxu0 }
 0x56b   :  { %v3904_v47 = vld [vmem:[%s5032_s9 + $0xe4] ss:$8 sps:$4 sm:$0xff]  }
 0x56c   :  { %v2103_v49 = vpop.f32.mrf.mxu0 }
 0x56d   :  { %2138 = vrot.lane.b32.xlu1 %v2103_v49, %s3965_s18  ;;  %v3902_v49 = vld [vmem:[%s5032_s9 + $0xe0] ss:$8 sps:$4 sm:$0xff]  }
 0x56e   :  { %v3614_v42 = vpop.f32.mrf.mxu0 }
 0x56f   :  { %v3907_v42 = vld [vmem:[%s5032_s9 + $0xd4] ss:$8 sps:$4 sm:$0xff]  }
 0x570   :  { %v2108_v50 = vpop.f32.mrf.mxu0 }
 0x571   :  { %2142 = vst.msk [vmem:[#allocation3 + $0x18] sm:$0xff] %vm2122_vm8, %v2108_v50  ;;  %v3905_v50 = vld [vmem:[%s5032_s9 + $0xd0] ss:$8 sps:$4 sm:$0xff]  }
 0x572   :  { %v3617_v51 = vpop.f32.mrf.mxu0 }
 0x573   :  { %v3910_v51 = vld [vmem:[%s5032_s9 + $0xc4] ss:$8 sps:$4 sm:$0xff]  }
 0x574   :  { %v2111_v53 = vpop.f32.mrf.mxu0 }
 0x575   :  { %2144 = vrot.lane.b32.xlu0 %v2111_v53, %s3965_s18  ;;  %v3908_v53 = vld [vmem:[%s5032_s9 + $0xc0] ss:$8 sps:$4 sm:$0xff]  }
 0x576   :  { %v3618_v54 = vpop.f32.mrf.mxu0 }
 0x577   :  { %v3913_v54 = vld [vmem:[%s5032_s9 + $0xb4] ss:$8 sps:$4 sm:$0xff]  }
 0x578   :  { %v2116_v43 = vpop.f32.mrf.mxu0 }
 0x579   :  { %2148 = vst.msk [vmem:[#allocation3 + $0x20] sm:$0xff] %vm2122_vm8, %v2116_v43  ;;  %v3911_v43 = vld [vmem:[%s5032_s9 + $0xb0] ss:$8 sps:$4 sm:$0xff]  }
 0x57a   :  { %v3621_v55 = vpop.f32.mrf.mxu0 }
 0x57b   :  { %v3916_v55 = vld [vmem:[%s5032_s9 + $0xa4] ss:$8 sps:$4 sm:$0xff]  }
 0x57c   :  { %v2119_v57 = vpop.f32.mrf.mxu0 }
 0x57d   :  { %v3914_v57 = vld [vmem:[%s5032_s9 + $0xa0] ss:$8 sps:$4 sm:$0xff]  }
 0x57e   :  { %v3622_v23 = vpop.f32.mrf.mxu0 }
 0x57f   :  { %v3919_v23 = vld [vmem:[%s5032_s9 + $0x94] ss:$8 sps:$4 sm:$0xff]  }
 0x580   :  { %v2153_v41 = vld [vmem:[#allocation3 + $0x20] sm:$0xff] }
 0x581   :  { %v2230_v9 = vpack.c.bf16 %v2153_v41, %v2153_v41  ;;  %v3927_v41 = vld [vmem:[%s5034_s11 + $0x68] sm:$0xff]  }
 0x5cf   :  { %v2126_v1 = vpop.permute.xlu1 %2125 }
 0x5d0   :  { %2129 = vst.msk [vmem:[#allocation3] sm:$0xff] %vm2128_vm9, %v2126_v1 }
 0x5d7   :  { %v2133_v2 = vpop.permute.xlu0 %2132  ;;  %v2149_v3 = vld [vmem:[#allocation3] sm:$0xff] }
 0x5d8   :  { %2135 = vst.msk [vmem:[#allocation3 + $0x8] sm:$0xff] %vm2128_vm9, %v2133_v2  ;;  %v2226_v8 = vpack.c.bf16 %v2149_v3, %v2149_v3  ;;  %v3968_v3 = vmov 1983009808  }
 0x5df   :  { %v2150_v4 = vld [vmem:[#allocation3 + $0x8] sm:$0xff]  ;;  %v2139_v5 = vpop.permute.xlu1 %2138 }
 0x5e0   :  { %v2227_v6 = vpack.c.bf16 %v2150_v4, %v2150_v4  ;;  %2141 = vst.msk [vmem:[#allocation3 + $0x10] sm:$0xff] %vm2128_vm9, %v2139_v5  ;;  %v2582_v4 = vunpack.c.l.s4 %v3968_v3  ;;  %v3261_v5 = vld [vmem:[%s5031_s8] ss:$0 sm:$0xff] }
 0x5e2   :  { %2489 = vmatprep.mubr.bf16.mxu0 %v2227_v6 }
 0x5e3   :  { %2490 = vmatmul.mubr.bf16.vlgmr.msra.gmra.mxu0 %v2226_v8  ;;  %v2583_v8 = vunpack.c.0.s8 %v2582_v4 }
 0x5e4   :  { %3551 = vmatpush3.bf16.msra.mxu0 %v3856_v7 }
 0x5e5   :  { %3552 = vmatprep.subr.bf16.mxu0 %v3857_v17 }
 0x5e7   :  { %v2145_v15 = vpop.permute.xlu0 %2144  ;;  %v2151_v32 = vld [vmem:[#allocation3 + $0x10] sm:$0xff] }
 0x5e8   :  { %3553 = vmatpush3.bf16.msra.mxu0 %v3858_v18  ;;  %2147 = vst.msk [vmem:[#allocation3 + $0x18] sm:$0xff] %vm2128_vm9, %v2145_v15  ;;  %v2228_v34 = vpack.c.bf16 %v2151_v32, %v2151_v32  ;;  %v2586_v15 = vsub.s32 %v2583_v8, %v4249_v11  ;;  %v3336_v8 = vld [vmem:[%s5035_s12] ss:$0 sm:$0xff] }
 0x5e9   :  { %3554 = vmatprep.subr.bf16.mxu0 %v3859_v19 }
 0x5ec   :  { %3555 = vmatpush3.bf16.msra.mxu0 %v3860_v20 }
 0x5ed   :  { %3556 = vmatprep.subr.bf16.mxu0 %v3861_v21  ;;  %v3920_v21 = vld [vmem:[%s5032_s9 + $0x80] ss:$8 sps:$4 sm:$0xff]  }
 0x5ef   :  { %v2152_v14 = vld [vmem:[#allocation3 + $0x18] sm:$0xff] }
 0x5f0   :  { %3557 = vmatpush3.bf16.msra.mxu0 %v3862_v22  ;;  %v2229_v25 = vpack.c.bf16 %v2152_v14, %v2152_v14  ;;  %v3922_v22 = vld [vmem:[%s5032_s9 + $0x84] ss:$8 sps:$4 sm:$0xff]  }
 0x5f1   :  { %3558 = vmatprep.subr.bf16.mxu0 %v3863_v13 }
 0x5f2   :  { %2529 = vmatprep.mubr.bf16.mxu0 %v2229_v25 }
 0x5f4   :  { %3559 = vmatpush3.bf16.msra.mxu0 %v3864_v24 }
 0x5f5   :  { %3560 = vmatprep.subr.bf16.mxu0 %v3865_v26 }
 0x5f8   :  { %3561 = vmatpush3.bf16.msra.mxu0 %v3866_v10 }
 0x5f9   :  { %3562 = vmatprep.subr.bf16.mxu0 %v3867_v12 }
 0x5fc   :  { %3563 = vmatpush3.bf16.msra.mxu0 %v3868_v28 }
 0x5fd   :  { %3564 = vmatprep.subr.bf16.mxu0 %v3869_v29 }
 0x600   :  { %3565 = vmatpush3.bf16.msra.mxu0 %v3870_v31 }
 0x601   :  { %3623 = vmatprep.subr.bf16.mxu0 %v3963_v16 }
 0x603   :  { %2530 = vmatmul.mubr.bf16.vlgmr.msra.gmra.mxu0 %v2228_v34  ;;  %v3923_v34 = vld [vmem:[%s5034_s11 + $0x78] sm:$0xff]  }
 0x604   :  { %3624 = vmatpush3.bf16.msra.mxu0 %v3871_v33  ;;  %3631 = vmatprep.mubr.msk.bf16.mxu0 %vm3967_vm7, %v3963_v16 }
 0x605   :  { %3625 = vmatprep.subr.bf16.mxu0 %v3963_v16 }
 0x608   :  { %3626 = vmatpush3.bf16.msra.mxu0 %v3872_v36  ;;  %v3924_v36 = vld [vmem:[%s5034_s11 + $0x38] sm:$0xff]  }
 0x609   :  { %3627 = vmatprep.subr.bf16.mxu0 %v3963_v16 }
 0x60c   :  { %3628 = vmatpush3.bf16.msra.mxu0 %v3873_v37  ;;  %v3925_v37 = vld [vmem:[%s5034_s11 + $0x70] sm:$0xff]  }
 0x60d   :  { %3629 = vmatprep.subr.bf16.mxu0 %v3963_v16  ;;  %v3890_v16 = vld [vmem:[%s5032_s9 + $0x20] ss:$8 sps:$4 sm:$0xff]  }
 0x60e   :  { %2858 = vmatpush1.bf16.msra.mxu1 %v3890_v16  ;;  %v3932_v16 = vld [vmem:[%s5034_s11 + $0x18] sm:$0xff]  }
 0x60f   :  { %2859 = vmatprep.subr.bf16.mxu1 %v3895_v52 }
 0x610   :  { %3630 = vmatpush3.bf16.msra.mxu0 %v3874_v40  ;;  %v3926_v40 = vld [vmem:[%s5034_s11 + $0x30] sm:$0xff]  }
 0x611   :  { %3577 = vmatprep.subr.bf16.mxu0 %v3923_v34 }
 0x612   :  { %2860 = vmatpush1.bf16.msra.mxu1 %v3893_v27  ;;  %v3933_v27 = vld [vmem:[%s5034_s11 + $0x50] sm:$0xff]  }
 0x613   :  { %3632 = vmatmul.mubr.msk.bf16.vlgmr.msra.gmra.mxu0 %vm2122_vm8, %v2230_v9  ;;  %2861 = vmatprep.subr.bf16.mxu1 %v3898_v45  ;;  %v3928_v9 = vld [vmem:[%s5034_s11 + $0x28] sm:$0xff]  }
 0x614   :  { %3578 = vmatpush3.bf16.msra.mxu0 %v3924_v36 }
 0x615   :  { %3579 = vmatprep.subr.bf16.mxu0 %v3925_v37 }
 0x616   :  { %2862 = vmatpush1.bf16.msra.mxu1 %v3896_v30 }
 0x617   :  { %2863 = vmatprep.subr.bf16.mxu1 %v3901_v38 }
 0x618   :  { %3580 = vmatpush3.bf16.msra.mxu0 %v3926_v40 }
 0x619   :  { %3581 = vmatprep.subr.bf16.mxu0 %v3927_v41 }
 0x61a   :  { %2864 = vmatpush2.bf16.msra.mxu1 %v3899_v48 }
 0x61b   :  { %2865 = vmatprep.subr.bf16.mxu1 %v3904_v47 }
 0x61c   :  { %3582 = vmatpush3.bf16.msra.mxu0 %v3928_v9 }
 0x61d   :  { %3583 = vmatprep.subr.bf16.mxu0 %v3929_v35 }
 0x61e   :  { %2866 = vmatpush2.bf16.msra.mxu1 %v3902_v49 }
 0x61f   :  { %2867 = vmatprep.subr.bf16.mxu1 %v3907_v42 }
 0x620   :  { %3584 = vmatpush3.bf16.msra.mxu0 %v3930_v39 }
 0x621   :  { %3585 = vmatprep.subr.bf16.mxu0 %v3931_v44 }
 0x622   :  { %2868 = vmatpush2.bf16.msra.mxu1 %v3905_v50  ;;  %v3934_v50 = vld [vmem:[%s5034_s11 + $0x10] sm:$0xff]  }
 0x623   :  { %2869 = vmatprep.subr.bf16.mxu1 %v3910_v51  ;;  %v3935_v51 = vld [vmem:[%s5034_s11 + $0x48] sm:$0xff]  }
 0x624   :  { %3586 = vmatpush3.bf16.msra.mxu0 %v3932_v16 }
 0x625   :  { %3587 = vmatprep.subr.bf16.mxu0 %v3933_v27 }
 0x626   :  { %2870 = vmatpush2.bf16.msra.mxu1 %v3908_v53  ;;  %v3936_v53 = vld [vmem:[%s5034_s11 + $0x8] sm:$0xff]  }
 0x627   :  { %2871 = vmatprep.subr.bf16.mxu1 %v3913_v54  ;;  %v3937_v54 = vld [vmem:[%s5034_s11 + $0x40] sm:$0xff]  }
 0x628   :  { %3588 = vmatpush3.bf16.msra.mxu0 %v3934_v50 }
 0x629   :  { %3589 = vmatprep.subr.bf16.mxu0 %v3935_v51 }
 0x62a   :  { %2872 = vmatpush2.bf16.msra.mxu1 %v3911_v43  ;;  %v3938_v43 = vld [vmem:[%s5034_s11] sm:$0xff]  }
 0x62b   :  { %2873 = vmatprep.subr.bf16.mxu1 %v3916_v55  ;;  %v2679_v55 = vsub.s32 0, %v4249_v11 }
 0x62c   :  { %3590 = vmatpush3.bf16.msra.mxu0 %v3936_v53 }
 0x62d   :  { %3591 = vmatprep.subr.bf16.mxu0 %v3937_v54 }
 0x62e   :  { %2874 = vmatpush2.bf16.msra.mxu1 %v3914_v57  ;;  %v2675_v57 = vld [vmem:[%s5033_s10] sm:$0x3] }
 0x62f   :  { %2875 = vmatprep.subr.bf16.mxu1 %v3919_v23  ;;  %v2683_v23 = vsub.s32 1, %v4249_v11  ;;  %v3072_v11 = vand.u32 127, %v566_v56 }
 0x630   :  { %3592 = vmatpush3.bf16.msra.mxu0 %v3938_v43 }
 0x631   :  { %vm3080_vm14 = vcmp.eq.s32.totalorder %v3072_v11, 6  ;;  %vm3073_vm15 = vcmp.lt.s32.totalorder %v3072_v11, 6 }
 0x632   :  { %2876 = vmatpush2.bf16.msra.mxu1 %v3917_v58  ;;  %v2680_v58 = vrot.slane %v2675_v57, %v2679_v55 }
 0x633   :  { %2877 = vmatprep.subr.bf16.mxu1 %v3922_v22 }
 0x636   :  { %2878 = vmatpush2.bf16.msra.mxu1 %v3920_v21 }
 0x6a3   :  { %v3544_v59 = vpop.f32.mrf.mxu0 }
 0x6a5   :  { %v3545_v60 = vpop.f32.mrf.mxu0 }
 0x6a6   :  { %v3546_v2 = vadd.f32 %v3545_v60, %v3544_v59  ;;  %v2684_v59 = vrot.slane %v2675_v57, %v2683_v23 }
 0x6a7   :  { %v3547_v61 = vpop.f32.mrf.mxu0 }
 0x6a8   :  { %v2492_v7 = vadd.f32 %v3546_v2, %v3261_v5 }
 0x6a9   :  { %v3548_v46 = vpop.f32.mrf.mxu0 }
 0x6c3   :  { %v3566_v0 = vpop.f32.mrf.mxu0 }
 0x6c5   :  { %v3567_v62 = vpop.f32.mrf.mxu0 }
 0x6c6   :  { %v3568_v6 = vadd.f32 %v3567_v62, %v3566_v0 }
 0x6c7   :  { %v3569_v63 = vpop.f32.mrf.mxu0 }
 0x6c8   :  { %v2532_v17 = vadd.f32 %v3568_v6, %v2492_v7 }
 0x6c9   :  { %v3570_v1 = vpop.f32.mrf.mxu0 }
 0x6d3   :  { %v2571_v18 = vpop.f32.mrf.mxu0 }
 0x6d4   :  { %v2572_v19 = vadd.f32 %v2571_v18, %v2532_v17 }
 0x6d5   :  { %v3633_v20 = vpop.f32.mrf.mxu0 }
 0x6d6   :  { %v2577_v13 = vmax.f32 %v2572_v19, 0.0 }
 0x6d7   :  { %v2574_v14 = vpop.f32.mrf.mxu0 }
 0x6d8   :  { %v2587_v24 = vrot.slane %v2577_v13, %v2586_v15  ;;  %v2604_v25 = vcombine.high %v2577_v13, %v2577_v13  ;;  %2579 = vst.msk [vmem:[#allocation4] sm:$0x1] %vm2578_vm10, %v2577_v13 }
 0x6d9   :  { %v3634_v26 = vpop.f32.mrf.mxu0 }
 0x6da   :  { %v2611_v10 = vrot.slane %v2604_v25, %v2586_v15  ;;  %v3299_v12 = vrot.slane %v2587_v24, 9  ;;  %v2595_v28 = vcombine.high %v2587_v24, %v2587_v24 }
 0x6dc   :  { %2590 = vrot.lane.b32.xlu0 %v3299_v12, %s3965_s18  ;;  %v3300_v29 = vrot.slane %v2595_v28, 9  ;;  %v2620_v31 = vcombine.high %v2611_v10, %v2611_v10  ;;  %2597 = vst.msk [vmem:[#allocation4 + $0x2] sm:$0x1] %vm2578_vm10, %v2595_v28  ;;  %2613 = vst.msk [vmem:[#allocation4 + $0x1] sm:$0x1] %vm2578_vm10, %v2611_v10  ;;  %v3301_v32 = vrot.slane %v2611_v10, 9 }
 0x6de   :  { %2600 = vrot.lane.b32.xlu1 %v3300_v29, %s3965_s18  ;;  %2622 = vst.msk [vmem:[#allocation4 + $0x3] sm:$0x1] %vm2578_vm10, %v2620_v31  ;;  %v3302_v33 = vrot.slane %v2620_v31, 9 }
 0x6e0   :  { %2616 = vrot.lane.b32.xlu0 %v3301_v32, %s3965_s18 }
 0x6e2   :  { %2625 = vrot.lane.b32.xlu1 %v3302_v33, %s3965_s18  ;;  %s3094_s18 = sshll.u32 %s3969_s3, 4  ;;  %s3095_s18 = int_to_ptr.vmem [resolvable:$true] %s3094_s18 }
 0x6e3   :  { %s3939_s12 = scalar_lea.vmem %s3095_s18, 32  ;;  %p3944_p1 = scmp.lt.s32.totalorder %s3095_s18, %s3095_s18 }
 0x6e4   :  { %p3940_p0 = scmp.ne.s32.totalorder %s3095_s18, %s3939_s12  ;;  %p3945_p2 = scmp.lt.s32.totalorder %s3939_s12, %s3939_s12 }
 0x6e6   :  { %p3946_p3 = por %p3945_p2, %p3944_p1 }
 0x6e8   :  { %p3947_p4 = pnand %p3946_p3, %p3940_p0 }
 0x74e   :  { %v2591_v52 = vpop.permute.xlu0 %2590 }
 0x74f   :  { %2594 = vst.msk [vmem:[#allocation4] sm:$0x1] %vm2593_vm11, %v2591_v52 }
 0x750   :  { %v2601_v30 = vpop.permute.xlu1 %2600 }
 0x751   :  { %2603 = vst.msk [vmem:[#allocation4 + $0x2] sm:$0x1] %vm2593_vm11, %v2601_v30 }
 0x752   :  { %v2617_v45 = vpop.permute.xlu0 %2616 }
 0x753   :  { %2619 = vst.msk [vmem:[#allocation4 + $0x1] sm:$0x1] %vm2593_vm11, %v2617_v45 }
 0x754   :  { %v2626_v48 = vpop.permute.xlu1 %2625 }
 0x755   :  { %2628 = vst.msk [vmem:[#allocation4 + $0x3] sm:$0x1] %vm2593_vm11, %v2626_v48 }
 0x75c   :  { %v3303_v38 = vld.sshfl [vmem:[#allocation4] sm:$0x33 pattern:$0x76325410] }
 0x75d   :  { %v2670_v47 = vcombine.high %v3303_v38, %v3303_v38  ;;  %v2673_v42 = vpack.c.bf16 %v3303_v38, %v3303_v38 }
 0x75f   :  { %v2674_v49 = vpack.c.bf16 %v2670_v47, %v2670_v47 }
 0x761   :  { %2879 = vmatprep.mubr.bf16.mxu1 %v2674_v49 }
 0x762   :  { %2880 = vmatmul.mubr.bf16.vlgmr.msra.gmra.mxu1 %v2673_v42 }
 0x822   :  { %v2881_v60 = vpop.f32.mrf.mxu1 }
 0x823   :  { %v2882_v61 = vadd.f32 %v2881_v60, %v2680_v58 }
 0x824   :  { %v2883_v46 = vpop.f32.mrf.mxu1 }
 0x825   :  { %vm2888_vm12 = vcmp.gt.f32.partialorder %v2882_v61, 0.0  ;;  %v2890_v0 = vmul.f32 0.01, %v2882_v61  ;;  %v2884_v62 = vadd.f32 %v2883_v46, %v2684_v59 }
 0x826   :  { %v2885_v63 = vpop.f32.mrf.mxu1 }
 0x827   :  { %vm2889_vm13 = vcmp.gt.f32.partialorder %v2884_v62, 0.0  ;;  %v2891_v1 = vmul.f32 0.01, %v2884_v62  ;;  %v2892_v2 = vsel %vm2888_vm12, %v2882_v61, %v2890_v0 }
 0x828   :  { %v2886_v3 = vpop.f32.mrf.mxu1  ;;  %v2926_v6 = vpack.c.bf16 %v2892_v2, %v2892_v2 }
 0x829   :  { %v2893_v4 = vsel %vm2889_vm13, %v2884_v62, %v2891_v1 }
 0x82a   :  { %v2927_v5 = vpack.c.bf16 %v2893_v4, %v2893_v4 }
 0x82c   :  { %3063 = vmatprep.mubr.bf16.mxu0 %v2927_v5 }
 0x82d   :  { %3064 = vmatmul.mubr.bf16.vlgmr.msra.gmra.mxu0 %v2926_v6 }
 0x8ed   :  { %v3593_v7 = vpop.f32.mrf.mxu0 }
 0x8ef   :  { %v3594_v17 = vpop.f32.mrf.mxu0 }
 0x8f0   :  { %v3595_v18 = vadd.f32 %v3594_v17, %v3593_v7 }
 0x8f1   :  { %v3596_v19 = vpop.f32.mrf.mxu0 }
 0x8f2   :  { %v3066_v15 = vadd.f32 %v3595_v18, %v3336_v8 }
 0x8f3   :  { %v3597_v20 = vpop.f32.mrf.mxu0 }
 0x8f4   :  { %v3081_v21 = vsel %vm3080_vm14, %v3066_v15, 0.0  ;;  %v3074_v22 = vsel %vm3073_vm15, %v3066_v15, 0.0 }
 0x8f5   :  { %v3082_v13 = vsel %vm3075_vm0, %v3081_v21, 0.0  ;;  %v3076_v14 = vsel %vm3075_vm0, %v3074_v22, 0.0 }
 0x8f6   :  { %3083 = vadd.xlane.f32.xlu1 %v3082_v13  ;;  %3077 = vadd.xlane.f32.xlu0 %v3076_v14 }
 0x97f   :  { %v3084_v24 = vpop.xlane.xlu1 %3083  ;;  %v3078_v56 = vpop.xlane.xlu0 %3077 }
 0x980   :  { %v3085_v25 = vadd.f32 %v3084_v24, %v3066_v15  ;;  %v3079_v26 = vmul.f32 0.16666667, %v3078_v56 }
 0x982   :  { %v3086_v10 = vsub.f32 %v3085_v25, %v3079_v26 }
 0x984   :  { %3087 = vst [vmem:[#allocation5] sm:$0x3] %v3086_v10 }
 0x985   :  { %3950 = shalt.err (!%p3947_p4)
}
 0x986   :  { %3097 = dma.vmem_to_hbm [thread:$0]  %s3095_s18, 32, %s5036_s13, [#allocation6]  }
 0x987   :  { %3959 = dma.done.wait [#allocation6], 32  }
 0x988   :  { %3960 = vsyncadd [#allocation6], 4294967264 }
 0x989   :  { %3101 = vsyncpa [#allocation6], 1 }

</bundles_post_ra>
